<compile_context>
chip_gen: v6e
topology: v6e:2x2x1
jax: 0.10.0
libtpu: 0.0.40
codegen_flags: <defaults>
</compile_context>

<pallas_src>
import functools

import jax
import jax.numpy as jnp
from jax import lax
from jax.experimental import pallas as pl
from jax.experimental.pallas import tpu as pltpu

EPS = 1e-5
F32 = jnp.float32
BF16 = jnp.bfloat16


def _vmem_and_tile():
    # ~75% of physical VMEM, capped at 100 MiB (v5e/v6e: 128 MiB -> 96 MiB,
    # bigger M tiles; v7x: 64 MiB -> 48 MiB, keep 512-row tiles).
    try:
        cap = int(pltpu.get_tpu_info().vmem_capacity_bytes)
    except Exception:
        cap = 64 << 20
    limit = min((cap * 3) // 4, 100 << 20)
    tile_target = 1024 if limit >= (96 << 20) else 512
    return limit, tile_target


VMEM_LIMIT_BYTES, TILE_M_TARGET = _vmem_and_tile()


def _cparams():
    return pltpu.CompilerParams(
        dimension_semantics=("parallel",),
        vmem_limit_bytes=VMEM_LIMIT_BYTES,
    )


def _cost(flops, bytes_accessed):
    return pl.CostEstimate(flops=int(flops), transcendentals=0,
                           bytes_accessed=int(bytes_accessed))


def _pick_tile(m, target=None):
    """Largest divisor of m <= target, preferring multiples of 16 (bf16
    sublane packing), then 8, then any divisor.  Grid stays exact."""
    if target is None:
        target = TILE_M_TARGET
    cap = min(target, m)
    for step in (16, 8):
        t = cap - (cap % step)
        while t >= step:
            if m % t == 0:
                return t
            t -= step
    # TODO(synk): switch to pl.cdiv grids + masked stats for awkward m instead
    # of shrinking the tile.
    for t in range(cap, 0, -1):
        if m % t == 0:
            return t
    return m


# ---------------------------------------------------------------------------
# Kernels
# ---------------------------------------------------------------------------
def _conv1x1_stats_kernel(x_ref, w_ref, y_ref, sum_ref, sq_ref):
    # y = x @ w (bias dropped: cancelled by the following batch-norm), bf16
    # writeback, f32 per-tile partial sums for the BN batch statistics.
    y = jnp.dot(x_ref[...], w_ref[...], preferred_element_type=F32)
    y_ref[...] = y.astype(y_ref.dtype)
    sum_ref[0] = jnp.sum(y, axis=0, keepdims=True)
    sq_ref[0] = jnp.sum(y * y, axis=0, keepdims=True)


def _bn_relu_kernel(y_ref, scale_ref, shift_ref, o_ref):
    # Folded BN affine + ReLU in f32 (v5e-safe) on bf16-loaded data.
    y = y_ref[...].astype(F32)
    o_ref[...] = jnp.maximum(y * scale_ref[...] + shift_ref[...],
                             0.0).astype(o_ref.dtype)


def _bn_relu_conv3x3_stats_kernel(h1_ref, sc_ref, sh_ref, w_ref,
                                  y_ref, sum_ref, sq_ref, xp_ref, *, ho, wo):
    # Fused: BN1 affine + ReLU on the unpadded h1 tile, zero-halo padding in a
    # VMEM scratch, 3x3 stride-1 conv as 9 shifted-window MXU matmuls (no HBM
    # im2col / no HBM pad), plus per-image BN2 partial statistics.
    cin = h1_ref.shape[3]
    co = w_ref.shape[2]
    sc = sc_ref[...].reshape(1, 1, cin)
    sh = sh_ref[...].reshape(1, 1, cin)
    a1 = jnp.maximum(h1_ref[0].astype(F32) * sc + sh, 0.0)     # [ho, wo, cin]

    # Zero the whole scratch every step (megacore-safe), then write interior.
    xp_ref[...] = jnp.zeros_like(xp_ref)
    xp_ref[1:ho + 1, 1:wo + 1, :] = a1.astype(xp_ref.dtype)

    acc = jnp.zeros((ho * wo, co), F32)
    # TODO(synk): fold the 3 dx taps into one K=3*cin contraction per dy (and
    # tile spatial row bands with a halo) to avoid per-tap window relayouts.
    for dy in range(3):
        for dx in range(3):
            win = xp_ref[dy:dy + ho, dx:dx + wo, :]             # [ho, wo, cin] f32
            acc = acc + jnp.dot(win.reshape(ho * wo, cin),
                                w_ref[dy * 3 + dx].astype(F32),
                                preferred_element_type=F32)
    y_ref[0] = acc.astype(y_ref.dtype)
    sum_ref[0] = jnp.sum(acc, axis=0, keepdims=True)
    sq_ref[0] = jnp.sum(acc * acc, axis=0, keepdims=True)


def _conv3_skip_add_stats_kernel(h2_ref, sc2_ref, sh2_ref, w3_ref,
                                 xs_ref, ws_ref, y_ref, sum_ref, sq_ref):
    # relu(BN2(h2)) @ w3  +  xs @ ws  (+ BN3 partial stats), fully fused.
    a2 = jnp.maximum(h2_ref[...].astype(F32) * sc2_ref[...] + sh2_ref[...], 0.0)
    y = jnp.dot(a2.astype(BF16), w3_ref[...], preferred_element_type=F32)
    y = y + jnp.dot(xs_ref[...], ws_ref[...], preferred_element_type=F32)
    y_ref[...] = y.astype(y_ref.dtype)
    sum_ref[0] = jnp.sum(y, axis=0, keepdims=True)
    sq_ref[0] = jnp.sum(y * y, axis=0, keepdims=True)


def _conv3_ident_add_stats_kernel(h2_ref, sc2_ref, sh2_ref, w3_ref,
                                  xs_ref, y_ref, sum_ref, sq_ref):
    # relu(BN2(h2)) @ w3  +  xs  (identity skip), fully fused.
    a2 = jnp.maximum(h2_ref[...].astype(F32) * sc2_ref[...] + sh2_ref[...], 0.0)
    y = jnp.dot(a2.astype(BF16), w3_ref[...], preferred_element_type=F32)
    y = y + xs_ref[...].astype(F32)
    y_ref[...] = y.astype(y_ref.dtype)
    sum_ref[0] = jnp.sum(y, axis=0, keepdims=True)
    sq_ref[0] = jnp.sum(y * y, axis=0, keepdims=True)


# ---------------------------------------------------------------------------
# Wrappers (tiled pallas_calls)
# ---------------------------------------------------------------------------
def conv1x1_stats(x2d, w):
    m, k = x2d.shape
    c = w.shape[1]
    tm = _pick_tile(m)
    g = m // tm
    y, s, q = pl.pallas_call(
        _conv1x1_stats_kernel,
        grid=(g,),
        in_specs=[pl.BlockSpec((tm, k), lambda i: (i, 0)),
                  pl.BlockSpec((k, c), lambda i: (0, 0))],       # resident weight
        out_specs=[pl.BlockSpec((tm, c), lambda i: (i, 0)),
                   pl.BlockSpec((1, 1, c), lambda i: (i, 0, 0)),
                   pl.BlockSpec((1, 1, c), lambda i: (i, 0, 0))],
        out_shape=[jax.ShapeDtypeStruct((m, c), BF16),
                   jax.ShapeDtypeStruct((g, 1, c), F32),
                   jax.ShapeDtypeStruct((g, 1, c), F32)],
        compiler_params=_cparams(),
        cost_estimate=_cost(2 * m * k * c,
                            2 * (m * k + k * c + m * c) + 8 * g * c),
    )(x2d, w)
    return y, jnp.sum(s, axis=0), jnp.sum(q, axis=0)


def bn_relu_apply(y, scale, shift):
    m, c = y.shape
    tm = _pick_tile(m)
    g = m // tm
    return pl.pallas_call(
        _bn_relu_kernel,
        grid=(g,),
        in_specs=[pl.BlockSpec((tm, c), lambda i: (i, 0)),
                  pl.BlockSpec((1, c), lambda i: (0, 0)),
                  pl.BlockSpec((1, c), lambda i: (0, 0))],
        out_specs=pl.BlockSpec((tm, c), lambda i: (i, 0)),
        out_shape=jax.ShapeDtypeStruct((m, c), F32),
        compiler_params=_cparams(),
        cost_estimate=_cost(2 * m * c, 2 * m * c + 4 * m * c + 8 * c),
    )(y, scale, shift)


def bn_relu_conv3x3_stats(h1, sc, sh, w2, ho, wo):
    n, _, _, cin = h1.shape
    co = w2.shape[2]
    hp, wp = ho + 2, wo + 2
    kern = functools.partial(_bn_relu_conv3x3_stats_kernel, ho=ho, wo=wo)
    y, s, q = pl.pallas_call(
        kern,
        grid=(n,),
        in_specs=[pl.BlockSpec((1, ho, wo, cin), lambda i: (i, 0, 0, 0)),
                  pl.BlockSpec((1, cin), lambda i: (0, 0)),
                  pl.BlockSpec((1, cin), lambda i: (0, 0)),
                  pl.BlockSpec((9, cin, co), lambda i: (0, 0, 0))],
        out_specs=[pl.BlockSpec((1, ho * wo, co), lambda i: (i, 0, 0)),
                   pl.BlockSpec((1, 1, co), lambda i: (i, 0, 0)),
                   pl.BlockSpec((1, 1, co), lambda i: (i, 0, 0))],
        out_shape=[jax.ShapeDtypeStruct((n, ho * wo, co), BF16),
                   jax.ShapeDtypeStruct((n, 1, co), F32),
                   jax.ShapeDtypeStruct((n, 1, co), F32)],
        scratch_shapes=[pltpu.VMEM((hp, wp, cin), F32)],   # zero-halo pad buffer
        compiler_params=_cparams(),
        cost_estimate=_cost(2 * n * ho * wo * 9 * cin * co,
                            2 * (n * ho * wo * (cin + co) + 9 * cin * co)
                            + 8 * n * co),
    )(h1, sc, sh, w2)
    return y, jnp.sum(s, axis=0), jnp.sum(q, axis=0)


def conv3_skip_add_stats(h2, sc2, sh2, w3, xs, ws):
    m, mch = h2.shape
    ich = xs.shape[1]
    och = w3.shape[1]
    tm = _pick_tile(m)
    g = m // tm
    y, s, q = pl.pallas_call(
        _conv3_skip_add_stats_kernel,
        grid=(g,),
        in_specs=[pl.BlockSpec((tm, mch), lambda i: (i, 0)),
                  pl.BlockSpec((1, mch), lambda i: (0, 0)),
                  pl.BlockSpec((1, mch), lambda i: (0, 0)),
                  pl.BlockSpec((mch, och), lambda i: (0, 0)),
                  pl.BlockSpec((tm, ich), lambda i: (i, 0)),
                  pl.BlockSpec((ich, och), lambda i: (0, 0))],
        out_specs=[pl.BlockSpec((tm, och), lambda i: (i, 0)),
                   pl.BlockSpec((1, 1, och), lambda i: (i, 0, 0)),
                   pl.BlockSpec((1, 1, och), lambda i: (i, 0, 0))],
        out_shape=[jax.ShapeDtypeStruct((m, och), BF16),
                   jax.ShapeDtypeStruct((g, 1, och), F32),
                   jax.ShapeDtypeStruct((g, 1, och), F32)],
        compiler_params=_cparams(),
        cost_estimate=_cost(2 * m * och * (mch + ich),
                            2 * (m * (mch + ich + och) + och * (mch + ich))
                            + 8 * g * och),
    )(h2, sc2, sh2, w3, xs, ws)
    return y, jnp.sum(s, axis=0), jnp.sum(q, axis=0)


def conv3_ident_add_stats(h2, sc2, sh2, w3, xs):
    m, mch = h2.shape
    och = w3.shape[1]
    tm = _pick_tile(m)
    g = m // tm
    y, s, q = pl.pallas_call(
        _conv3_ident_add_stats_kernel,
        grid=(g,),
        in_specs=[pl.BlockSpec((tm, mch), lambda i: (i, 0)),
                  pl.BlockSpec((1, mch), lambda i: (0, 0)),
                  pl.BlockSpec((1, mch), lambda i: (0, 0)),
                  pl.BlockSpec((mch, och), lambda i: (0, 0)),
                  pl.BlockSpec((tm, och), lambda i: (i, 0))],
        out_specs=[pl.BlockSpec((tm, och), lambda i: (i, 0)),
                   pl.BlockSpec((1, 1, och), lambda i: (i, 0, 0)),
                   pl.BlockSpec((1, 1, och), lambda i: (i, 0, 0))],
        out_shape=[jax.ShapeDtypeStruct((m, och), BF16),
                   jax.ShapeDtypeStruct((g, 1, och), F32),
                   jax.ShapeDtypeStruct((g, 1, och), F32)],
        compiler_params=_cparams(),
        cost_estimate=_cost(2 * m * mch * och,
                            2 * (m * (mch + 2 * och) + mch * och)
                            + 8 * g * och),
    )(h2, sc2, sh2, w3, xs)
    return y, jnp.sum(s, axis=0), jnp.sum(q, axis=0)


# ---------------------------------------------------------------------------
# BN finalize: O(C) glue folding batch stats into per-channel (scale, shift)
# ---------------------------------------------------------------------------
def fold_bn(sum_c, sq_c, gamma, beta, count):
    mean = sum_c / count
    # Clamp: E[y^2] - mean^2 can go slightly negative from cancellation.
    var = jnp.maximum(sq_c / count - mean * mean, 0.0)
    scale = gamma * lax.rsqrt(var + EPS)
    shift = beta - mean * scale
    return scale, shift


# ---------------------------------------------------------------------------
# resblock forward
# ---------------------------------------------------------------------------
def resblock_forward(x_nchw, params, down=True):
    # NCHW -> NHWC (channels on lanes), stride-2 subsample of the 1x1 convs
    # and bf16 cast in one XLA copy.
    # TODO(synk): fold this transpose/subsample into the first kernel's input
    # BlockSpec (manual DMA) and pad channel dims to 128 lanes for real
    # ResNet channel counts.
    x = jnp.transpose(x_nchw, (0, 2, 3, 1))
    xs = (x[:, ::2, ::2, :] if down else x).astype(BF16)
    n, ho, wo, ich = xs.shape
    m = n * ho * wo
    count = jnp.float32(m)
    xs2d = xs.reshape(m, ich)
    mch = params["w1"].shape[1]

    # conv1 (1x1, bias dropped: cancelled by train-mode BN) + BN1 partial stats
    h1, s1, q1 = conv1x1_stats(xs2d, params["w1"])
    sc1, sh1 = fold_bn(s1, q1, params["g1"], params["be1"], count)

    # BN1+ReLU fused into the 3x3 conv (zero-halo pad in VMEM), conv2 as
    # 9 shifted-window MXU matmuls + BN2 partial stats.
    h2, s2, q2 = bn_relu_conv3x3_stats(h1.reshape(n, ho, wo, mch),
                                       sc1, sh1, params["w2"], ho, wo)
    sc2, sh2 = fold_bn(s2, q2, params["g2"], params["be2"], count)
    h2_2d = h2.reshape(m, mch)

    # BN2+ReLU fused with conv3 + skip conv / identity + add + BN3 stats
    if params["ws"] is not None:
        y, s3, q3 = conv3_skip_add_stats(h2_2d, sc2, sh2, params["w3"],
                                         xs2d, params["ws"])
    else:
        y, s3, q3 = conv3_ident_add_stats(h2_2d, sc2, sh2, params["w3"], xs2d)
    sc3, sh3 = fold_bn(s3, q3, params["g3"], params["be3"], count)

    # final BN + ReLU (f32 output at the module boundary)
    out2d = bn_relu_apply(y, sc3, sh3)
    out = out2d.reshape(n, ho, wo, -1)
    return jnp.transpose(out, (0, 3, 1, 2))      # back to NCHW


# ---------------------------------------------------------------------------
# Pure-JAX reference (NCHW, lax.conv, with the module's conv biases, f32)
# ---------------------------------------------------------------------------
def _conv_ref(x, w_oihw, b, stride, pad):
    y = lax.conv_general_dilated(
        x, w_oihw, (stride, stride), ((pad, pad), (pad, pad)),
        dimension_numbers=("NCHW", "OIHW", "NCHW"))
    return y + b.reshape(1, -1, 1, 1)


def _bn_relu_ref(x, g, beta, relu=True):
    mean = jnp.mean(x, axis=(0, 2, 3), keepdims=True)
    var = jnp.mean(jnp.square(x - mean), axis=(0, 2, 3), keepdims=True)
    y = (x - mean) * lax.rsqrt(var + EPS)
    y = y * g.reshape(1, -1, 1, 1) + beta.reshape(1, -1, 1, 1)
    return jnp.maximum(y, 0.0) if relu else y


def resblock_ref(x, P, down=True):
    s = 2 if down else 1
    h = _conv_ref(x, P["w1_oihw"], P["b1v"], s, 0)
    h = _bn_relu_ref(h, P["g1v"], P["be1v"])
    h = _conv_ref(h, P["w2_oihw"], P["b2v"], 1, 1)
    h = _bn_relu_ref(h, P["g2v"], P["be2v"])
    h = _conv_ref(h, P["w3_oihw"], P["b3v"], 1, 0)
    sk = _conv_ref(x, P["ws_oihw"], P["bsv"], s, 0) if P["ws_oihw"] is not None else x
    return _bn_relu_ref(h + sk, P["g3v"], P["be3v"])


# ---------------------------------------------------------------------------
def make_params(key, ich, mch, och, down=True):
    ks = jax.random.split(key, 16)
    f32 = jnp.float32

    def nrm(k, shape, scale=0.1):
        return (scale * jax.random.normal(k, shape)).astype(f32)

    w1 = nrm(ks[0], (mch, ich, 1, 1)); b1 = nrm(ks[1], (mch,))
    w2 = nrm(ks[2], (mch, mch, 3, 3)); b2 = nrm(ks[3], (mch,))
    w3 = nrm(ks[4], (och, mch, 1, 1)); b3 = nrm(ks[5], (och,))
    need_skip = down or (ich != och)
    ws = nrm(ks[6], (och, ich, 1, 1)) if need_skip else None
    bs = nrm(ks[7], (och,)) if need_skip else None
    g1, be1 = 1.0 + nrm(ks[8], (mch,)), nrm(ks[9], (mch,))
    g2, be2 = 1.0 + nrm(ks[10], (mch,)), nrm(ks[11], (mch,))
    g3, be3 = 1.0 + nrm(ks[12], (och,)), nrm(ks[13], (och,))

    # Matmul-form params for the Pallas path (bf16 weights, f32 BN affines).
    # Conv biases are intentionally dropped: every conv feeds a training-mode
    # BN whose batch-mean subtraction cancels per-channel constants exactly.
    params = {
        "w1": w1.reshape(mch, ich).T.astype(BF16),                       # [ich, mch]
        "w2": jnp.transpose(w2, (2, 3, 1, 0)).reshape(9, mch, mch).astype(BF16),
        "w3": w3.reshape(och, mch).T.astype(BF16),                       # [mch, och]
        "ws": ws.reshape(och, ich).T.astype(BF16) if ws is not None else None,
        "g1": g1.reshape(1, -1), "be1": be1.reshape(1, -1),
        "g2": g2.reshape(1, -1), "be2": be2.reshape(1, -1),
        "g3": g3.reshape(1, -1), "be3": be3.reshape(1, -1),
    }
    # Original (OIHW + bias) forms for the reference
    ref = {
        "w1_oihw": w1, "b1v": b1, "w2_oihw": w2, "b2v": b2,
        "w3_oihw": w3, "b3v": b3, "ws_oihw": ws, "bsv": bs,
        "g1v": g1, "be1v": be1, "g2v": g2, "be2v": be2, "g3v": g3, "be3v": be3,
    }
    return params, ref


if __name__ == "__main__":
    key = jax.random.PRNGKey(0)
    k1, k2, k3, k4 = jax.random.split(key, 4)

    fwd = jax.jit(resblock_forward, static_argnames=("down",))

    # Case 1: down=True with a 1x1 stride-2 skip conv.
    N, ich, mch, och, H, W = 2, 4, 4, 8, 16, 16
    x = jax.random.normal(k1, (N, ich, H, W), dtype=jnp.float32)
    params, ref_params = make_params(k2, ich, mch, och, down=True)
    out = jax.block_until_ready(fwd(x, params, down=True))
    exp = jax.block_until_ready(resblock_ref(x, ref_params, down=True))
    assert out.shape == exp.shape == (N, och, H // 2, W // 2), out.shape
    assert bool(jnp.all(jnp.isfinite(out)))
    err1 = float(jnp.max(jnp.abs(out - exp)))
    assert jnp.allclose(out, exp, rtol=5e-2, atol=5e-2), err1

    # Case 2: down=False, ich == och -> identity skip (no skip conv).
    N, ich, mch, och, H, W = 2, 8, 4, 8, 8, 8
    x = jax.random.normal(k3, (N, ich, H, W), dtype=jnp.float32)
    params, ref_params = make_params(k4, ich, mch, och, down=False)
    out = jax.block_until_ready(fwd(x, params, down=False))
    exp = jax.block_until_ready(resblock_ref(x, ref_params, down=False))
    assert out.shape == exp.shape == (N, och, H, W), out.shape
    assert bool(jnp.all(jnp.isfinite(out)))
    err2 = float(jnp.max(jnp.abs(out - exp)))
    assert jnp.allclose(out, exp, rtol=5e-2, atol=5e-2), err2

    print("KERNEL_OK")
</pallas_src>

<mosaic_0001>
module attributes {stable_mosaic.version = 11 : i64} {
  func.func @_conv1x1_stats_kernel(%arg0: i32, %arg1: memref<128x4xbf16, #tpu.memory_space<vmem>>, %arg2: memref<4x4xbf16, #tpu.memory_space<vmem>>, %arg3: memref<128x4xbf16, #tpu.memory_space<vmem>>, %arg4: memref<1x1x4xf32, #tpu.memory_space<vmem>>, %arg5: memref<1x1x4xf32, #tpu.memory_space<vmem>>) attributes {dimension_semantics = [#tpu.dimension_semantics<parallel>], iteration_bounds = array<i64: 1>, scalar_prefetch = 0 : i64, scratch_operands = 0 : i64, tpu.core_type = #tpu.core_type<tc>, window_params = [{transform_indices = @transform_0, window_bounds = array<i64: 128, 4>}, {pipeline_mode = #tpu.pipeline_mode<synchronous>, transform_indices = @transform_1, window_bounds = array<i64: 4, 4>}, {transform_indices = @transform_2, window_bounds = array<i64: 128, 4>}, {transform_indices = @transform_3, window_bounds = array<i64: 1, 1, 4>}, {transform_indices = @transform_4, window_bounds = array<i64: 1, 1, 4>}]} {
    %c0 = arith.constant 0 : index
    %c0_0 = arith.constant 0 : index
    %0 = vector.load %arg1[%c0, %c0_0] : memref<128x4xbf16, #tpu.memory_space<vmem>>, vector<128x4xbf16>
    %c0_1 = arith.constant 0 : index
    %c0_2 = arith.constant 0 : index
    %1 = vector.load %arg2[%c0_1, %c0_2] : memref<4x4xbf16, #tpu.memory_space<vmem>>, vector<4x4xbf16>
    %cst = arith.constant dense<0.000000e+00> : vector<128x4xf32>
    %2 = tpu.matmul %0, %1, %cst {dimension_numbers = #tpu.dot_dimension_numbers<[1], [0], [0], [1], [0, 0, 1, 1], [], []>} : vector<128x4xbf16>, vector<4x4xbf16>, vector<128x4xf32> -> vector<128x4xf32>
    %3 = arith.truncf %2 : vector<128x4xf32> to vector<128x4xbf16>
    %c0_3 = arith.constant 0 : index
    %c0_4 = arith.constant 0 : index
    %4 = vector.load %arg3[%c0_3, %c0_4] : memref<128x4xbf16, #tpu.memory_space<vmem>>, vector<128x4xbf16>
    tpu.vector_store %arg3[%c0_3, %c0_4], %3 {strides = array<i32>} : memref<128x4xbf16, #tpu.memory_space<vmem>>, vector<128x4xbf16>,
    %cst_5 = arith.constant dense<0.000000e+00> : vector<4xf32>
    %5 = vector.multi_reduction <add>, %2, %cst_5 [0] : vector<128x4xf32> to vector<4xf32>
    %6 = vector.shape_cast %5 : vector<4xf32> to vector<1x4xf32>
    %c0_6 = arith.constant 0 : index
    %c0_7 = arith.constant 0 : index
    %c0_8 = arith.constant 0 : index
    %7 = vector.load %arg4[%c0_6, %c0_7, %c0_8] : memref<1x1x4xf32, #tpu.memory_space<vmem>>, vector<1x1x4xf32>
    %8 = vector.shape_cast %7 : vector<1x1x4xf32> to vector<1x4xf32>
    %9 = vector.shape_cast %6 : vector<1x4xf32> to vector<1x1x4xf32>
    tpu.vector_store %arg4[%c0_6, %c0_7, %c0_8], %9 {strides = array<i32>} : memref<1x1x4xf32, #tpu.memory_space<vmem>>, vector<1x1x4xf32>,
    %10 = arith.mulf %2, %2 : vector<128x4xf32>
    %cst_9 = arith.constant dense<0.000000e+00> : vector<4xf32>
    %11 = vector.multi_reduction <add>, %10, %cst_9 [0] : vector<128x4xf32> to vector<4xf32>
    %12 = vector.shape_cast %11 : vector<4xf32> to vector<1x4xf32>
    %c0_10 = arith.constant 0 : index
    %c0_11 = arith.constant 0 : index
    %c0_12 = arith.constant 0 : index
    %13 = vector.load %arg5[%c0_10, %c0_11, %c0_12] : memref<1x1x4xf32, #tpu.memory_space<vmem>>, vector<1x1x4xf32>
    %14 = vector.shape_cast %13 : vector<1x1x4xf32> to vector<1x4xf32>
    %15 = vector.shape_cast %12 : vector<1x4xf32> to vector<1x1x4xf32>
    tpu.vector_store %arg5[%c0_10, %c0_11, %c0_12], %15 {strides = array<i32>} : memref<1x1x4xf32, #tpu.memory_space<vmem>>, vector<1x1x4xf32>,
    return
  }
  func.func @transform_0(%arg0: i32) -> (i32, i32) {
    %c0_i32 = arith.constant 0 : i32
    %c0_i32_0 = arith.constant 0 : i32
    return %arg0, %c0_i32 : i32, i32
  }
  func.func @transform_1(%arg0: i32) -> (i32, i32) {
    %c0_i32 = arith.constant 0 : i32
    %c0_i32_0 = arith.constant 0 : i32
    %c0_i32_1 = arith.constant 0 : i32
    return %c0_i32, %c0_i32_0 : i32, i32
  }
  func.func @transform_2(%arg0: i32) -> (i32, i32) {
    %c0_i32 = arith.constant 0 : i32
    %c0_i32_0 = arith.constant 0 : i32
    return %arg0, %c0_i32 : i32, i32
  }
  func.func @transform_3(%arg0: i32) -> (i32, i32, i32) {
    %c0_i32 = arith.constant 0 : i32
    %c0_i32_0 = arith.constant 0 : i32
    %c0_i32_1 = arith.constant 0 : i32
    return %arg0, %c0_i32, %c0_i32_0 : i32, i32, i32
  }
  func.func @transform_4(%arg0: i32) -> (i32, i32, i32) {
    %c0_i32 = arith.constant 0 : i32
    %c0_i32_0 = arith.constant 0 : i32
    %c0_i32_1 = arith.constant 0 : i32
    return %arg0, %c0_i32, %c0_i32_0 : i32, i32, i32
  }
}

module attributes {stable_mosaic.version = 11 : i64} {
  func.func @_bn_relu_conv3x3_stats_kernel(%arg0: i32, %arg1: memref<1x8x8x4xbf16, #tpu.memory_space<vmem>>, %arg2: memref<1x4xf32, #tpu.memory_space<vmem>>, %arg3: memref<1x4xf32, #tpu.memory_space<vmem>>, %arg4: memref<9x4x4xbf16, #tpu.memory_space<vmem>>, %arg5: memref<1x64x4xbf16, #tpu.memory_space<vmem>>, %arg6: memref<1x1x4xf32, #tpu.memory_space<vmem>>, %arg7: memref<1x1x4xf32, #tpu.memory_space<vmem>>, %arg8: memref<10x10x4xf32, #tpu.memory_space<vmem>>) attributes {dimension_semantics = [#tpu.dimension_semantics<parallel>], iteration_bounds = array<i64: 2>, scalar_prefetch = 0 : i64, scratch_operands = 1 : i64, tpu.core_type = #tpu.core_type<tc>, window_params = [{transform_indices = @transform_0, window_bounds = array<i64: 1, 8, 8, 4>}, {pipeline_mode = #tpu.pipeline_mode<synchronous>, transform_indices = @transform_1, window_bounds = array<i64: 1, 4>}, {pipeline_mode = #tpu.pipeline_mode<synchronous>, transform_indices = @transform_2, window_bounds = array<i64: 1, 4>}, {pipeline_mode = #tpu.pipeline_mode<synchronous>, transform_indices = @transform_3, window_bounds = array<i64: 9, 4, 4>}, {transform_indices = @transform_4, window_bounds = array<i64: 1, 64, 4>}, {transform_indices = @transform_5, window_bounds = array<i64: 1, 1, 4>}, {transform_indices = @transform_6, window_bounds = array<i64: 1, 1, 4>}]} {
    %c0 = arith.constant 0 : index
    %c0_0 = arith.constant 0 : index
    %0 = vector.load %arg2[%c0, %c0_0] : memref<1x4xf32, #tpu.memory_space<vmem>>, vector<1x4xf32>
    %1 = vector.shape_cast %0 : vector<1x4xf32> to vector<1x1x4xf32>
    %c0_1 = arith.constant 0 : index
    %c0_2 = arith.constant 0 : index
    %2 = vector.load %arg3[%c0_1, %c0_2] : memref<1x4xf32, #tpu.memory_space<vmem>>, vector<1x4xf32>
    %3 = vector.shape_cast %2 : vector<1x4xf32> to vector<1x1x4xf32>
    %c0_3 = arith.constant 0 : index
    %c0_4 = arith.constant 0 : index
    %c0_5 = arith.constant 0 : index
    %c0_6 = arith.constant 0 : index
    %4 = vector.load %arg1[%c0_3, %c0_4, %c0_5, %c0_6] : memref<1x8x8x4xbf16, #tpu.memory_space<vmem>>, vector<1x8x8x4xbf16>
    %5 = vector.shape_cast %4 : vector<1x8x8x4xbf16> to vector<8x8x4xbf16>
    %6 = arith.extf %5 : vector<8x8x4xbf16> to vector<8x8x4xf32>
    %7 = vector.broadcast %1 : vector<1x1x4xf32> to vector<8x8x4xf32>
    %8 = arith.mulf %6, %7 : vector<8x8x4xf32>
    %9 = vector.broadcast %3 : vector<1x1x4xf32> to vector<8x8x4xf32>
    %10 = arith.addf %8, %9 : vector<8x8x4xf32>
    %cst = arith.constant 0.000000e+00 : f32
    %11 = vector.broadcast %cst : f32 to vector<8x8x4xf32>
    %12 = arith.maximumf %10, %11 : vector<8x8x4xf32>
    %cst_7 = arith.constant 0.000000e+00 : f32
    %13 = vector.broadcast %cst_7 : f32 to vector<10x10x4xf32>
    %c0_8 = arith.constant 0 : index
    %c0_9 = arith.constant 0 : index
    %c0_10 = arith.constant 0 : index
    %14 = vector.load %arg8[%c0_8, %c0_9, %c0_10] : memref<10x10x4xf32, #tpu.memory_space<vmem>>, vector<10x10x4xf32>
    tpu.vector_store %arg8[%c0_8, %c0_9, %c0_10], %13 {strides = array<i32>} : memref<10x10x4xf32, #tpu.memory_space<vmem>>, vector<10x10x4xf32>,
    %c1 = arith.constant 1 : index
    %c1_11 = arith.constant 1 : index
    %c0_12 = arith.constant 0 : index
    %15 = vector.load %arg8[%c1, %c1_11, %c0_12] : memref<10x10x4xf32, #tpu.memory_space<vmem>>, vector<8x8x4xf32>
    tpu.vector_store %arg8[%c1, %c1_11, %c0_12], %12 {strides = array<i32>} : memref<10x10x4xf32, #tpu.memory_space<vmem>>, vector<8x8x4xf32>,
    %cst_13 = arith.constant 0.000000e+00 : f32
    %16 = vector.broadcast %cst_13 : f32 to vector<64x4xf32>
    %c0_14 = arith.constant 0 : index
    %c0_15 = arith.constant 0 : index
    %c0_16 = arith.constant 0 : index
    %17 = vector.load %arg8[%c0_14, %c0_15, %c0_16] : memref<10x10x4xf32, #tpu.memory_space<vmem>>, vector<8x8x4xf32>
    %18 = vector.shape_cast %17 : vector<8x8x4xf32> to vector<64x4xf32>
    %c0_17 = arith.constant 0 : index
    %c0_18 = arith.constant 0 : index
    %c0_19 = arith.constant 0 : index
    %19 = vector.load %arg4[%c0_17, %c0_18, %c0_19] : memref<9x4x4xbf16, #tpu.memory_space<vmem>>, vector<1x4x4xbf16>
    %20 = vector.shape_cast %19 : vector<1x4x4xbf16> to vector<4x4xbf16>
    %21 = arith.extf %20 : vector<4x4xbf16> to vector<4x4xf32>
    %cst_20 = arith.constant dense<0.000000e+00> : vector<64x4xf32>
    %22 = tpu.matmul %18, %21, %cst_20 {dimension_numbers = #tpu.dot_dimension_numbers<[1], [0], [0], [1], [0, 0, 1, 1], [], []>} : vector<64x4xf32>, vector<4x4xf32>, vector<64x4xf32> -> vector<64x4xf32>
    %23 = arith.addf %16, %22 : vector<64x4xf32>
    %c0_21 = arith.constant 0 : index
    %c1_22 = arith.constant 1 : index
    %c0_23 = arith.constant 0 : index
    %24 = vector.load %arg8[%c0_21, %c1_22, %c0_23] : memref<10x10x4xf32, #tpu.memory_space<vmem>>, vector<8x8x4xf32>
    %25 = vector.shape_cast %24 : vector<8x8x4xf32> to vector<64x4xf32>
    %c1_24 = arith.constant 1 : index
    %c0_25 = arith.constant 0 : index
    %c0_26 = arith.constant 0 : index
    %26 = vector.load %arg4[%c1_24, %c0_25, %c0_26] : memref<9x4x4xbf16, #tpu.memory_space<vmem>>, vector<1x4x4xbf16>
    %27 = vector.shape_cast %26 : vector<1x4x4xbf16> to vector<4x4xbf16>
    %28 = arith.extf %27 : vector<4x4xbf16> to vector<4x4xf32>
    %cst_27 = arith.constant dense<0.000000e+00> : vector<64x4xf32>
    %29 = tpu.matmul %25, %28, %cst_27 {dimension_numbers = #tpu.dot_dimension_numbers<[1], [0], [0], [1], [0, 0, 1, 1], [], []>} : vector<64x4xf32>, vector<4x4xf32>, vector<64x4xf32> -> vector<64x4xf32>
    %30 = arith.addf %23, %29 : vector<64x4xf32>
    %c0_28 = arith.constant 0 : index
    %c2 = arith.constant 2 : index
    %c0_29 = arith.constant 0 : index
    %31 = vector.load %arg8[%c0_28, %c2, %c0_29] : memref<10x10x4xf32, #tpu.memory_space<vmem>>, vector<8x8x4xf32>
    %32 = vector.shape_cast %31 : vector<8x8x4xf32> to vector<64x4xf32>
    %c2_30 = arith.constant 2 : index
    %c0_31 = arith.constant 0 : index
    %c0_32 = arith.constant 0 : index
    %33 = vector.load %arg4[%c2_30, %c0_31, %c0_32] : memref<9x4x4xbf16, #tpu.memory_space<vmem>>, vector<1x4x4xbf16>
    %34 = vector.shape_cast %33 : vector<1x4x4xbf16> to vector<4x4xbf16>
    %35 = arith.extf %34 : vector<4x4xbf16> to vector<4x4xf32>
    %cst_33 = arith.constant dense<0.000000e+00> : vector<64x4xf32>
    %36 = tpu.matmul %32, %35, %cst_33 {dimension_numbers = #tpu.dot_dimension_numbers<[1], [0], [0], [1], [0, 0, 1, 1], [], []>} : vector<64x4xf32>, vector<4x4xf32>, vector<64x4xf32> -> vector<64x4xf32>
    %37 = arith.addf %30, %36 : vector<64x4xf32>
    %c1_34 = arith.constant 1 : index
    %c0_35 = arith.constant 0 : index
    %c0_36 = arith.constant 0 : index
    %38 = vector.load %arg8[%c1_34, %c0_35, %c0_36] : memref<10x10x4xf32, #tpu.memory_space<vmem>>, vector<8x8x4xf32>
    %39 = vector.shape_cast %38 : vector<8x8x4xf32> to vector<64x4xf32>
    %c3 = arith.constant 3 : index
    %c0_37 = arith.constant 0 : index
    %c0_38 = arith.constant 0 : index
    %40 = vector.load %arg4[%c3, %c0_37, %c0_38] : memref<9x4x4xbf16, #tpu.memory_space<vmem>>, vector<1x4x4xbf16>
    %41 = vector.shape_cast %40 : vector<1x4x4xbf16> to vector<4x4xbf16>
    %42 = arith.extf %41 : vector<4x4xbf16> to vector<4x4xf32>
    %cst_39 = arith.constant dense<0.000000e+00> : vector<64x4xf32>
    %43 = tpu.matmul %39, %42, %cst_39 {dimension_numbers = #tpu.dot_dimension_numbers<[1], [0], [0], [1], [0, 0, 1, 1], [], []>} : vector<64x4xf32>, vector<4x4xf32>, vector<64x4xf32> -> vector<64x4xf32>
    %44 = arith.addf %37, %43 : vector<64x4xf32>
    %c1_40 = arith.constant 1 : index
    %c1_41 = arith.constant 1 : index
    %c0_42 = arith.constant 0 : index
    %45 = vector.load %arg8[%c1_40, %c1_41, %c0_42] : memref<10x10x4xf32, #tpu.memory_space<vmem>>, vector<8x8x4xf32>
    %46 = vector.shape_cast %45 : vector<8x8x4xf32> to vector<64x4xf32>
    %c4 = arith.constant 4 : index
    %c0_43 = arith.constant 0 : index
    %c0_44 = arith.constant 0 : index
    %47 = vector.load %arg4[%c4, %c0_43, %c0_44] : memref<9x4x4xbf16, #tpu.memory_space<vmem>>, vector<1x4x4xbf16>
    %48 = vector.shape_cast %47 : vector<1x4x4xbf16> to vector<4x4xbf16>
    %49 = arith.extf %48 : vector<4x4xbf16> to vector<4x4xf32>
    %cst_45 = arith.constant dense<0.000000e+00> : vector<64x4xf32>
    %50 = tpu.matmul %46, %49, %cst_45 {dimension_numbers = #tpu.dot_dimension_numbers<[1], [0], [0], [1], [0, 0, 1, 1], [], []>} : vector<64x4xf32>, vector<4x4xf32>, vector<64x4xf32> -> vector<64x4xf32>
    %51 = arith.addf %44, %50 : vector<64x4xf32>
    %c1_46 = arith.constant 1 : index
    %c2_47 = arith.constant 2 : index
    %c0_48 = arith.constant 0 : index
    %52 = vector.load %arg8[%c1_46, %c2_47, %c0_48] : memref<10x10x4xf32, #tpu.memory_space<vmem>>, vector<8x8x4xf32>
    %53 = vector.shape_cast %52 : vector<8x8x4xf32> to vector<64x4xf32>
    %c5 = arith.constant 5 : index
    %c0_49 = arith.constant 0 : index
    %c0_50 = arith.constant 0 : index
    %54 = vector.load %arg4[%c5, %c0_49, %c0_50] : memref<9x4x4xbf16, #tpu.memory_space<vmem>>, vector<1x4x4xbf16>
    %55 = vector.shape_cast %54 : vector<1x4x4xbf16> to vector<4x4xbf16>
    %56 = arith.extf %55 : vector<4x4xbf16> to vector<4x4xf32>
    %cst_51 = arith.constant dense<0.000000e+00> : vector<64x4xf32>
    %57 = tpu.matmul %53, %56, %cst_51 {dimension_numbers = #tpu.dot_dimension_numbers<[1], [0], [0], [1], [0, 0, 1, 1], [], []>} : vector<64x4xf32>, vector<4x4xf32>, vector<64x4xf32> -> vector<64x4xf32>
    %58 = arith.addf %51, %57 : vector<64x4xf32>
    %c2_52 = arith.constant 2 : index
    %c0_53 = arith.constant 0 : index
    %c0_54 = arith.constant 0 : index
    %59 = vector.load %arg8[%c2_52, %c0_53, %c0_54] : memref<10x10x4xf32, #tpu.memory_space<vmem>>, vector<8x8x4xf32>
    %60 = vector.shape_cast %59 : vector<8x8x4xf32> to vector<64x4xf32>
    %c6 = arith.constant 6 : index
    %c0_55 = arith.constant 0 : index
    %c0_56 = arith.constant 0 : index
    %61 = vector.load %arg4[%c6, %c0_55, %c0_56] : memref<9x4x4xbf16, #tpu.memory_space<vmem>>, vector<1x4x4xbf16>
    %62 = vector.shape_cast %61 : vector<1x4x4xbf16> to vector<4x4xbf16>
    %63 = arith.extf %62 : vector<4x4xbf16> to vector<4x4xf32>
    %cst_57 = arith.constant dense<0.000000e+00> : vector<64x4xf32>
    %64 = tpu.matmul %60, %63, %cst_57 {dimension_numbers = #tpu.dot_dimension_numbers<[1], [0], [0], [1], [0, 0, 1, 1], [], []>} : vector<64x4xf32>, vector<4x4xf32>, vector<64x4xf32> -> vector<64x4xf32>
    %65 = arith.addf %58, %64 : vector<64x4xf32>
    %c2_58 = arith.constant 2 : index
    %c1_59 = arith.constant 1 : index
    %c0_60 = arith.constant 0 : index
    %66 = vector.load %arg8[%c2_58, %c1_59, %c0_60] : memref<10x10x4xf32, #tpu.memory_space<vmem>>, vector<8x8x4xf32>
    %67 = vector.shape_cast %66 : vector<8x8x4xf32> to vector<64x4xf32>
    %c7 = arith.constant 7 : index
    %c0_61 = arith.constant 0 : index
    %c0_62 = arith.constant 0 : index
    %68 = vector.load %arg4[%c7, %c0_61, %c0_62] : memref<9x4x4xbf16, #tpu.memory_space<vmem>>, vector<1x4x4xbf16>
    %69 = vector.shape_cast %68 : vector<1x4x4xbf16> to vector<4x4xbf16>
    %70 = arith.extf %69 : vector<4x4xbf16> to vector<4x4xf32>
    %cst_63 = arith.constant dense<0.000000e+00> : vector<64x4xf32>
    %71 = tpu.matmul %67, %70, %cst_63 {dimension_numbers = #tpu.dot_dimension_numbers<[1], [0], [0], [1], [0, 0, 1, 1], [], []>} : vector<64x4xf32>, vector<4x4xf32>, vector<64x4xf32> -> vector<64x4xf32>
    %72 = arith.addf %65, %71 : vector<64x4xf32>
    %c2_64 = arith.constant 2 : index
    %c2_65 = arith.constant 2 : index
    %c0_66 = arith.constant 0 : index
    %73 = vector.load %arg8[%c2_64, %c2_65, %c0_66] : memref<10x10x4xf32, #tpu.memory_space<vmem>>, vector<8x8x4xf32>
    %74 = vector.shape_cast %73 : vector<8x8x4xf32> to vector<64x4xf32>
    %c8 = arith.constant 8 : index
    %c0_67 = arith.constant 0 : index
    %c0_68 = arith.constant 0 : index
    %75 = vector.load %arg4[%c8, %c0_67, %c0_68] : memref<9x4x4xbf16, #tpu.memory_space<vmem>>, vector<1x4x4xbf16>
    %76 = vector.shape_cast %75 : vector<1x4x4xbf16> to vector<4x4xbf16>
    %77 = arith.extf %76 : vector<4x4xbf16> to vector<4x4xf32>
    %cst_69 = arith.constant dense<0.000000e+00> : vector<64x4xf32>
    %78 = tpu.matmul %74, %77, %cst_69 {dimension_numbers = #tpu.dot_dimension_numbers<[1], [0], [0], [1], [0, 0, 1, 1], [], []>} : vector<64x4xf32>, vector<4x4xf32>, vector<64x4xf32> -> vector<64x4xf32>
    %79 = arith.addf %72, %78 : vector<64x4xf32>
    %80 = arith.truncf %79 : vector<64x4xf32> to vector<64x4xbf16>
    %c0_70 = arith.constant 0 : index
    %c0_71 = arith.constant 0 : index
    %c0_72 = arith.constant 0 : index
    %81 = vector.load %arg5[%c0_70, %c0_71, %c0_72] : memref<1x64x4xbf16, #tpu.memory_space<vmem>>, vector<1x64x4xbf16>
    %82 = vector.shape_cast %81 : vector<1x64x4xbf16> to vector<64x4xbf16>
    %83 = vector.shape_cast %80 : vector<64x4xbf16> to vector<1x64x4xbf16>
    tpu.vector_store %arg5[%c0_70, %c0_71, %c0_72], %83 {strides = array<i32>} : memref<1x64x4xbf16, #tpu.memory_space<vmem>>, vector<1x64x4xbf16>,
    %cst_73 = arith.constant dense<0.000000e+00> : vector<4xf32>
    %84 = vector.multi_reduction <add>, %79, %cst_73 [0] : vector<64x4xf32> to vector<4xf32>
    %85 = vector.shape_cast %84 : vector<4xf32> to vector<1x4xf32>
    %c0_74 = arith.constant 0 : index
    %c0_75 = arith.constant 0 : index
    %c0_76 = arith.constant 0 : index
    %86 = vector.load %arg6[%c0_74, %c0_75, %c0_76] : memref<1x1x4xf32, #tpu.memory_space<vmem>>, vector<1x1x4xf32>
    %87 = vector.shape_cast %86 : vector<1x1x4xf32> to vector<1x4xf32>
    %88 = vector.shape_cast %85 : vector<1x4xf32> to vector<1x1x4xf32>
    tpu.vector_store %arg6[%c0_74, %c0_75, %c0_76], %88 {strides = array<i32>} : memref<1x1x4xf32, #tpu.memory_space<vmem>>, vector<1x1x4xf32>,
    %89 = arith.mulf %79, %79 : vector<64x4xf32>
    %cst_77 = arith.constant dense<0.000000e+00> : vector<4xf32>
    %90 = vector.multi_reduction <add>, %89, %cst_77 [0] : vector<64x4xf32> to vector<4xf32>
    %91 = vector.shape_cast %90 : vector<4xf32> to vector<1x4xf32>
    %c0_78 = arith.constant 0 : index
    %c0_79 = arith.constant 0 : index
    %c0_80 = arith.constant 0 : index
    %92 = vector.load %arg7[%c0_78, %c0_79, %c0_80] : memref<1x1x4xf32, #tpu.memory_space<vmem>>, vector<1x1x4xf32>
    %93 = vector.shape_cast %92 : vector<1x1x4xf32> to vector<1x4xf32>
    %94 = vector.shape_cast %91 : vector<1x4xf32> to vector<1x1x4xf32>
    tpu.vector_store %arg7[%c0_78, %c0_79, %c0_80], %94 {strides = array<i32>} : memref<1x1x4xf32, #tpu.memory_space<vmem>>, vector<1x1x4xf32>,
    return
  }
  func.func @transform_0(%arg0: i32) -> (i32, i32, i32, i32) {
    %c0_i32 = arith.constant 0 : i32
    %c0_i32_0 = arith.constant 0 : i32
    %c0_i32_1 = arith.constant 0 : i32
    %c0_i32_2 = arith.constant 0 : i32
    return %arg0, %c0_i32, %c0_i32_0, %c0_i32_1 : i32, i32, i32, i32
  }
  func.func @transform_1(%arg0: i32) -> (i32, i32) {
    %c0_i32 = arith.constant 0 : i32
    %c0_i32_0 = arith.constant 0 : i32
    %c0_i32_1 = arith.constant 0 : i32
    return %c0_i32, %c0_i32_0 : i32, i32
  }
  func.func @transform_2(%arg0: i32) -> (i32, i32) {
    %c0_i32 = arith.constant 0 : i32
    %c0_i32_0 = arith.constant 0 : i32
    %c0_i32_1 = arith.constant 0 : i32
    return %c0_i32, %c0_i32_0 : i32, i32
  }
  func.func @transform_3(%arg0: i32) -> (i32, i32, i32) {
    %c0_i32 = arith.constant 0 : i32
    %c0_i32_0 = arith.constant 0 : i32
    %c0_i32_1 = arith.constant 0 : i32
    %c0_i32_2 = arith.constant 0 : i32
    return %c0_i32, %c0_i32_0, %c0_i32_1 : i32, i32, i32
  }
  func.func @transform_4(%arg0: i32) -> (i32, i32, i32) {
    %c0_i32 = arith.constant 0 : i32
    %c0_i32_0 = arith.constant 0 : i32
    %c0_i32_1 = arith.constant 0 : i32
    return %arg0, %c0_i32, %c0_i32_0 : i32, i32, i32
  }
  func.func @transform_5(%arg0: i32) -> (i32, i32, i32) {
    %c0_i32 = arith.constant 0 : i32
    %c0_i32_0 = arith.constant 0 : i32
    %c0_i32_1 = arith.constant 0 : i32
    return %arg0, %c0_i32, %c0_i32_0 : i32, i32, i32
  }
  func.func @transform_6(%arg0: i32) -> (i32, i32, i32) {
    %c0_i32 = arith.constant 0 : i32
    %c0_i32_0 = arith.constant 0 : i32
    %c0_i32_1 = arith.constant 0 : i32
    return %arg0, %c0_i32, %c0_i32_0 : i32, i32, i32
  }
}

module attributes {stable_mosaic.version = 11 : i64} {
  func.func @_conv3_skip_add_stats_kernel(%arg0: i32, %arg1: memref<128x4xbf16, #tpu.memory_space<vmem>>, %arg2: memref<1x4xf32, #tpu.memory_space<vmem>>, %arg3: memref<1x4xf32, #tpu.memory_space<vmem>>, %arg4: memref<4x8xbf16, #tpu.memory_space<vmem>>, %arg5: memref<128x4xbf16, #tpu.memory_space<vmem>>, %arg6: memref<4x8xbf16, #tpu.memory_space<vmem>>, %arg7: memref<128x8xbf16, #tpu.memory_space<vmem>>, %arg8: memref<1x1x8xf32, #tpu.memory_space<vmem>>, %arg9: memref<1x1x8xf32, #tpu.memory_space<vmem>>) attributes {dimension_semantics = [#tpu.dimension_semantics<parallel>], iteration_bounds = array<i64: 1>, scalar_prefetch = 0 : i64, scratch_operands = 0 : i64, tpu.core_type = #tpu.core_type<tc>, window_params = [{transform_indices = @transform_0, window_bounds = array<i64: 128, 4>}, {pipeline_mode = #tpu.pipeline_mode<synchronous>, transform_indices = @transform_1, window_bounds = array<i64: 1, 4>}, {pipeline_mode = #tpu.pipeline_mode<synchronous>, transform_indices = @transform_2, window_bounds = array<i64: 1, 4>}, {pipeline_mode = #tpu.pipeline_mode<synchronous>, transform_indices = @transform_3, window_bounds = array<i64: 4, 8>}, {transform_indices = @transform_4, window_bounds = array<i64: 128, 4>}, {pipeline_mode = #tpu.pipeline_mode<synchronous>, transform_indices = @transform_5, window_bounds = array<i64: 4, 8>}, {transform_indices = @transform_6, window_bounds = array<i64: 128, 8>}, {transform_indices = @transform_7, window_bounds = array<i64: 1, 1, 8>}, {transform_indices = @transform_8, window_bounds = array<i64: 1, 1, 8>}]} {
    %c0 = arith.constant 0 : index
    %c0_0 = arith.constant 0 : index
    %0 = vector.load %arg1[%c0, %c0_0] : memref<128x4xbf16, #tpu.memory_space<vmem>>, vector<128x4xbf16>
    %1 = arith.extf %0 : vector<128x4xbf16> to vector<128x4xf32>
    %c0_1 = arith.constant 0 : index
    %c0_2 = arith.constant 0 : index
    %2 = vector.load %arg2[%c0_1, %c0_2] : memref<1x4xf32, #tpu.memory_space<vmem>>, vector<1x4xf32>
    %3 = vector.broadcast %2 : vector<1x4xf32> to vector<128x4xf32>
    %4 = arith.mulf %1, %3 : vector<128x4xf32>
    %c0_3 = arith.constant 0 : index
    %c0_4 = arith.constant 0 : index
    %5 = vector.load %arg3[%c0_3, %c0_4] : memref<1x4xf32, #tpu.memory_space<vmem>>, vector<1x4xf32>
    %6 = vector.broadcast %5 : vector<1x4xf32> to vector<128x4xf32>
    %7 = arith.addf %4, %6 : vector<128x4xf32>
    %cst = arith.constant 0.000000e+00 : f32
    %8 = vector.broadcast %cst : f32 to vector<128x4xf32>
    %9 = arith.maximumf %7, %8 : vector<128x4xf32>
    %10 = arith.truncf %9 : vector<128x4xf32> to vector<128x4xbf16>
    %c0_5 = arith.constant 0 : index
    %c0_6 = arith.constant 0 : index
    %11 = vector.load %arg4[%c0_5, %c0_6] : memref<4x8xbf16, #tpu.memory_space<vmem>>, vector<4x8xbf16>
    %cst_7 = arith.constant dense<0.000000e+00> : vector<128x8xf32>
    %12 = tpu.matmul %10, %11, %cst_7 {dimension_numbers = #tpu.dot_dimension_numbers<[1], [0], [0], [1], [0, 0, 1, 1], [], []>} : vector<128x4xbf16>, vector<4x8xbf16>, vector<128x8xf32> -> vector<128x8xf32>
    %c0_8 = arith.constant 0 : index
    %c0_9 = arith.constant 0 : index
    %13 = vector.load %arg5[%c0_8, %c0_9] : memref<128x4xbf16, #tpu.memory_space<vmem>>, vector<128x4xbf16>
    %c0_10 = arith.constant 0 : index
    %c0_11 = arith.constant 0 : index
    %14 = vector.load %arg6[%c0_10, %c0_11] : memref<4x8xbf16, #tpu.memory_space<vmem>>, vector<4x8xbf16>
    %cst_12 = arith.constant dense<0.000000e+00> : vector<128x8xf32>
    %15 = tpu.matmul %13, %14, %cst_12 {dimension_numbers = #tpu.dot_dimension_numbers<[1], [0], [0], [1], [0, 0, 1, 1], [], []>} : vector<128x4xbf16>, vector<4x8xbf16>, vector<128x8xf32> -> vector<128x8xf32>
    %16 = arith.addf %12, %15 : vector<128x8xf32>
    %17 = arith.truncf %16 : vector<128x8xf32> to vector<128x8xbf16>
    %c0_13 = arith.constant 0 : index
    %c0_14 = arith.constant 0 : index
    %18 = vector.load %arg7[%c0_13, %c0_14] : memref<128x8xbf16, #tpu.memory_space<vmem>>, vector<128x8xbf16>
    tpu.vector_store %arg7[%c0_13, %c0_14], %17 {strides = array<i32>} : memref<128x8xbf16, #tpu.memory_space<vmem>>, vector<128x8xbf16>,
    %cst_15 = arith.constant dense<0.000000e+00> : vector<8xf32>
    %19 = vector.multi_reduction <add>, %16, %cst_15 [0] : vector<128x8xf32> to vector<8xf32>
    %20 = vector.shape_cast %19 : vector<8xf32> to vector<1x8xf32>
    %c0_16 = arith.constant 0 : index
    %c0_17 = arith.constant 0 : index
    %c0_18 = arith.constant 0 : index
    %21 = vector.load %arg8[%c0_16, %c0_17, %c0_18] : memref<1x1x8xf32, #tpu.memory_space<vmem>>, vector<1x1x8xf32>
    %22 = vector.shape_cast %21 : vector<1x1x8xf32> to vector<1x8xf32>
    %23 = vector.shape_cast %20 : vector<1x8xf32> to vector<1x1x8xf32>
    tpu.vector_store %arg8[%c0_16, %c0_17, %c0_18], %23 {strides = array<i32>} : memref<1x1x8xf32, #tpu.memory_space<vmem>>, vector<1x1x8xf32>,
    %24 = arith.mulf %16, %16 : vector<128x8xf32>
    %cst_19 = arith.constant dense<0.000000e+00> : vector<8xf32>
    %25 = vector.multi_reduction <add>, %24, %cst_19 [0] : vector<128x8xf32> to vector<8xf32>
    %26 = vector.shape_cast %25 : vector<8xf32> to vector<1x8xf32>
    %c0_20 = arith.constant 0 : index
    %c0_21 = arith.constant 0 : index
    %c0_22 = arith.constant 0 : index
    %27 = vector.load %arg9[%c0_20, %c0_21, %c0_22] : memref<1x1x8xf32, #tpu.memory_space<vmem>>, vector<1x1x8xf32>
    %28 = vector.shape_cast %27 : vector<1x1x8xf32> to vector<1x8xf32>
    %29 = vector.shape_cast %26 : vector<1x8xf32> to vector<1x1x8xf32>
    tpu.vector_store %arg9[%c0_20, %c0_21, %c0_22], %29 {strides = array<i32>} : memref<1x1x8xf32, #tpu.memory_space<vmem>>, vector<1x1x8xf32>,
    return
  }
  func.func @transform_0(%arg0: i32) -> (i32, i32) {
    %c0_i32 = arith.constant 0 : i32
    %c0_i32_0 = arith.constant 0 : i32
    return %arg0, %c0_i32 : i32, i32
  }
  func.func @transform_1(%arg0: i32) -> (i32, i32) {
    %c0_i32 = arith.constant 0 : i32
    %c0_i32_0 = arith.constant 0 : i32
    %c0_i32_1 = arith.constant 0 : i32
    return %c0_i32, %c0_i32_0 : i32, i32
  }
  func.func @transform_2(%arg0: i32) -> (i32, i32) {
    %c0_i32 = arith.constant 0 : i32
    %c0_i32_0 = arith.constant 0 : i32
    %c0_i32_1 = arith.constant 0 : i32
    return %c0_i32, %c0_i32_0 : i32, i32
  }
  func.func @transform_3(%arg0: i32) -> (i32, i32) {
    %c0_i32 = arith.constant 0 : i32
    %c0_i32_0 = arith.constant 0 : i32
    %c0_i32_1 = arith.constant 0 : i32
    return %c0_i32, %c0_i32_0 : i32, i32
  }
  func.func @transform_4(%arg0: i32) -> (i32, i32) {
    %c0_i32 = arith.constant 0 : i32
    %c0_i32_0 = arith.constant 0 : i32
    return %arg0, %c0_i32 : i32, i32
  }
  func.func @transform_5(%arg0: i32) -> (i32, i32) {
    %c0_i32 = arith.constant 0 : i32
    %c0_i32_0 = arith.constant 0 : i32
    %c0_i32_1 = arith.constant 0 : i32
    return %c0_i32, %c0_i32_0 : i32, i32
  }
  func.func @transform_6(%arg0: i32) -> (i32, i32) {
    %c0_i32 = arith.constant 0 : i32
    %c0_i32_0 = arith.constant 0 : i32
    return %arg0, %c0_i32 : i32, i32
  }
  func.func @transform_7(%arg0: i32) -> (i32, i32, i32) {
    %c0_i32 = arith.constant 0 : i32
    %c0_i32_0 = arith.constant 0 : i32
    %c0_i32_1 = arith.constant 0 : i32
    return %arg0, %c0_i32, %c0_i32_0 : i32, i32, i32
  }
  func.func @transform_8(%arg0: i32) -> (i32, i32, i32) {
    %c0_i32 = arith.constant 0 : i32
    %c0_i32_0 = arith.constant 0 : i32
    %c0_i32_1 = arith.constant 0 : i32
    return %arg0, %c0_i32, %c0_i32_0 : i32, i32, i32
  }
}

module attributes {stable_mosaic.version = 11 : i64} {
  func.func @_bn_relu_kernel(%arg0: i32, %arg1: memref<128x8xbf16, #tpu.memory_space<vmem>>, %arg2: memref<1x8xf32, #tpu.memory_space<vmem>>, %arg3: memref<1x8xf32, #tpu.memory_space<vmem>>, %arg4: memref<128x8xf32, #tpu.memory_space<vmem>>) attributes {dimension_semantics = [#tpu.dimension_semantics<parallel>], iteration_bounds = array<i64: 1>, scalar_prefetch = 0 : i64, scratch_operands = 0 : i64, tpu.core_type = #tpu.core_type<tc>, window_params = [{transform_indices = @transform_0, window_bounds = array<i64: 128, 8>}, {pipeline_mode = #tpu.pipeline_mode<synchronous>, transform_indices = @transform_1, window_bounds = array<i64: 1, 8>}, {pipeline_mode = #tpu.pipeline_mode<synchronous>, transform_indices = @transform_2, window_bounds = array<i64: 1, 8>}, {transform_indices = @transform_3, window_bounds = array<i64: 128, 8>}]} {
    %c0 = arith.constant 0 : index
    %c0_0 = arith.constant 0 : index
    %0 = vector.load %arg1[%c0, %c0_0] : memref<128x8xbf16, #tpu.memory_space<vmem>>, vector<128x8xbf16>
    %1 = arith.extf %0 : vector<128x8xbf16> to vector<128x8xf32>
    %c0_1 = arith.constant 0 : index
    %c0_2 = arith.constant 0 : index
    %2 = vector.load %arg2[%c0_1, %c0_2] : memref<1x8xf32, #tpu.memory_space<vmem>>, vector<1x8xf32>
    %3 = vector.broadcast %2 : vector<1x8xf32> to vector<128x8xf32>
    %4 = arith.mulf %1, %3 : vector<128x8xf32>
    %c0_3 = arith.constant 0 : index
    %c0_4 = arith.constant 0 : index
    %5 = vector.load %arg3[%c0_3, %c0_4] : memref<1x8xf32, #tpu.memory_space<vmem>>, vector<1x8xf32>
    %6 = vector.broadcast %5 : vector<1x8xf32> to vector<128x8xf32>
    %7 = arith.addf %4, %6 : vector<128x8xf32>
    %cst = arith.constant 0.000000e+00 : f32
    %8 = vector.broadcast %cst : f32 to vector<128x8xf32>
    %9 = arith.maximumf %7, %8 : vector<128x8xf32>
    %c0_5 = arith.constant 0 : index
    %c0_6 = arith.constant 0 : index
    %10 = vector.load %arg4[%c0_5, %c0_6] : memref<128x8xf32, #tpu.memory_space<vmem>>, vector<128x8xf32>
    tpu.vector_store %arg4[%c0_5, %c0_6], %9 {strides = array<i32>} : memref<128x8xf32, #tpu.memory_space<vmem>>, vector<128x8xf32>,
    return
  }
  func.func @transform_0(%arg0: i32) -> (i32, i32) {
    %c0_i32 = arith.constant 0 : i32
    %c0_i32_0 = arith.constant 0 : i32
    return %arg0, %c0_i32 : i32, i32
  }
  func.func @transform_1(%arg0: i32) -> (i32, i32) {
    %c0_i32 = arith.constant 0 : i32
    %c0_i32_0 = arith.constant 0 : i32
    %c0_i32_1 = arith.constant 0 : i32
    return %c0_i32, %c0_i32_0 : i32, i32
  }
  func.func @transform_2(%arg0: i32) -> (i32, i32) {
    %c0_i32 = arith.constant 0 : i32
    %c0_i32_0 = arith.constant 0 : i32
    %c0_i32_1 = arith.constant 0 : i32
    return %c0_i32, %c0_i32_0 : i32, i32
  }
  func.func @transform_3(%arg0: i32) -> (i32, i32) {
    %c0_i32 = arith.constant 0 : i32
    %c0_i32_0 = arith.constant 0 : i32
    return %arg0, %c0_i32 : i32, i32
  }
}

</mosaic_0001>

<bundles_post_ra>
// kernel: resblock_forward.7
= control target key start
LH: loop header
LB: loop body
LE: loop exit
PB: predicated region body
PF: predicated region fallthrough
CT: control target
= control target key end

     0   :  { %vm108_vm0 = vcmask 64512   ;;  %s320_s0 = inlined_call_operand.vmem [shape: bf16[128,8], index: 0, kind: input, shape index: {}]   ;;  %s321_s1 = inlined_call_operand.vmem [shape: f32[1,8], index: 1, kind: input, shape index: {}]   ;;  %s322_s2 = inlined_call_operand.vmem [shape: f32[1,8], index: 2, kind: input, shape index: {}]   ;;  %s323_s3 = inlined_call_operand.vmem [shape: f32[128,8], index: 3, kind: output, shape index: {}]  }
   0x1   :  { %v132_v0 = vld [vmem:[%s320_s0] sm:$0xff]   ;;  %v163_v4 = vld [vmem:[%s320_s0 + $0x8] sm:$0xff]   ;;  %v164_v5 = vld [vmem:[%s320_s0 + $0x10] sm:$0xff]  }
   0x2   :  { %v196_v1 = vld [vmem:[%s321_s1] ss:$0 sm:$0xff]  ;;  %v133_v2 = vunpack.c.l.bf16 %v132_v0  ;;  %v134_v3 = vunpack.c.h.bf16 %v132_v0  ;;  %v165_v6 = vld [vmem:[%s320_s0 + $0x18] sm:$0xff]   ;;  %v137_v8 = vunpack.c.l.bf16 %v163_v4  ;;  %v138_v9 = vunpack.c.h.bf16 %v163_v4  ;;  %v167_v33 = vld [vmem:[%s320_s0 + $0x28] sm:$0xff]  }
   0x3   :  { %v210_v7 = vld [vmem:[%s322_s2] ss:$0 sm:$0xff]  ;;  %v141_v10 = vunpack.c.l.bf16 %v164_v5  ;;  %v142_v11 = vunpack.c.h.bf16 %v164_v5  ;;  %v145_v14 = vunpack.c.l.bf16 %v165_v6  ;;  %v146_v15 = vunpack.c.h.bf16 %v165_v6  ;;  %v168_v34 = vld [vmem:[%s320_s0 + $0x30] sm:$0xff]   ;;  %v169_v39 = vld [vmem:[%s320_s0 + $0x38] sm:$0xff]  }
   0x4   :  { %v53_v12 = vmul.f32 %v133_v2, %v196_v1  ;;  %v54_v13 = vmul.f32 %v134_v3, %v196_v1  ;;  %v55_v16 = vmul.f32 %v137_v8, %v196_v1  ;;  %v56_v17 = vmul.f32 %v138_v9, %v196_v1  ;;  %v166_v28 = vld [vmem:[%s320_s0 + $0x20] sm:$0xff]  }
   0x5   :  { %v57_v18 = vmul.f32 %v141_v10, %v196_v1  ;;  %v58_v19 = vmul.f32 %v142_v11, %v196_v1  ;;  %v59_v22 = vmul.f32 %v145_v14, %v196_v1  ;;  %v60_v23 = vmul.f32 %v146_v15, %v196_v1 }
   0x6   :  { %v76_v20 = vadd.f32 %v210_v7, %v53_v12  ;;  %v77_v21 = vadd.f32 %v210_v7, %v54_v13  ;;  %v78_v24 = vadd.f32 %v210_v7, %v55_v16  ;;  %v79_v25 = vadd.f32 %v210_v7, %v56_v17 }
   0x7   :  { %v80_v26 = vadd.f32 %v210_v7, %v57_v18  ;;  %v81_v27 = vadd.f32 %v210_v7, %v58_v19  ;;  %v82_v31 = vadd.f32 %v210_v7, %v59_v22  ;;  %v83_v32 = vadd.f32 %v210_v7, %v60_v23 }
   0x8   :  { %v92_v29 = vmax.f32 %v76_v20, 0.0  ;;  %v93_v30 = vmax.f32 %v77_v21, 0.0  ;;  %v94_v35 = vmax.f32 %v78_v24, 0.0  ;;  %v95_v36 = vmax.f32 %v79_v25, 0.0 }
   0x9   :  { %v96_v37 = vmax.f32 %v80_v26, 0.0  ;;  %v97_v38 = vmax.f32 %v81_v27, 0.0  ;;  %v98_v40 = vmax.f32 %v82_v31, 0.0  ;;  %v99_v41 = vmax.f32 %v83_v32, 0.0 }
   0xa   :  { %109 = vst.msk [vmem:[%s323_s3] sm:$0xff] %vm108_vm0, %v92_v29  ;;  %110 = vst.msk [vmem:[%s323_s3 + $0x8] sm:$0xff] %vm108_vm0, %v93_v30  ;;  %v149_v42 = vunpack.c.l.bf16 %v166_v28  ;;  %v150_v43 = vunpack.c.h.bf16 %v166_v28  ;;  %v153_v44 = vunpack.c.l.bf16 %v167_v33  ;;  %v154_v45 = vunpack.c.h.bf16 %v167_v33 }
   0xb   :  { %111 = vst.msk [vmem:[%s323_s3 + $0x10] sm:$0xff] %vm108_vm0, %v94_v35  ;;  %112 = vst.msk [vmem:[%s323_s3 + $0x18] sm:$0xff] %vm108_vm0, %v95_v36  ;;  %v157_v46 = vunpack.c.l.bf16 %v168_v34  ;;  %v158_v47 = vunpack.c.h.bf16 %v168_v34  ;;  %v161_v50 = vunpack.c.l.bf16 %v169_v39  ;;  %v162_v51 = vunpack.c.h.bf16 %v169_v39 }
   0xc   :  { %113 = vst.msk [vmem:[%s323_s3 + $0x20] sm:$0xff] %vm108_vm0, %v96_v37  ;;  %114 = vst.msk [vmem:[%s323_s3 + $0x28] sm:$0xff] %vm108_vm0, %v97_v38  ;;  %v61_v48 = vmul.f32 %v149_v42, %v196_v1  ;;  %v62_v49 = vmul.f32 %v150_v43, %v196_v1  ;;  %v63_v52 = vmul.f32 %v153_v44, %v196_v1 }
   0xd   :  { %115 = vst.msk [vmem:[%s323_s3 + $0x30] sm:$0xff] %vm108_vm0, %v98_v40  ;;  %116 = vst.msk [vmem:[%s323_s3 + $0x38] sm:$0xff] %vm108_vm0, %v99_v41  ;;  %v64_v53 = vmul.f32 %v154_v45, %v196_v1  ;;  %v65_v54 = vmul.f32 %v157_v46, %v196_v1  ;;  %v66_v55 = vmul.f32 %v158_v47, %v196_v1 }
   0xe   :  { %v84_v56 = vadd.f32 %v210_v7, %v61_v48  ;;  %v85_v57 = vadd.f32 %v210_v7, %v62_v49  ;;  %v67_v58 = vmul.f32 %v161_v50, %v196_v1  ;;  %v68_v59 = vmul.f32 %v162_v51, %v196_v1 }
   0xf   :  { %v86_v60 = vadd.f32 %v210_v7, %v63_v52  ;;  %v87_v61 = vadd.f32 %v210_v7, %v64_v53  ;;  %v88_v62 = vadd.f32 %v210_v7, %v65_v54  ;;  %v89_v63 = vadd.f32 %v210_v7, %v66_v55 }
  0x10   :  { %v100_v0 = vmax.f32 %v84_v56, 0.0  ;;  %v101_v2 = vmax.f32 %v85_v57, 0.0  ;;  %v90_v3 = vadd.f32 %v210_v7, %v67_v58  ;;  %v91_v4 = vadd.f32 %v210_v7, %v68_v59 }
  0x11   :  { %v102_v5 = vmax.f32 %v86_v60, 0.0  ;;  %v103_v6 = vmax.f32 %v87_v61, 0.0  ;;  %v104_v8 = vmax.f32 %v88_v62, 0.0  ;;  %v105_v9 = vmax.f32 %v89_v63, 0.0 }
  0x12   :  { %117 = vst.msk [vmem:[%s323_s3 + $0x40] sm:$0xff] %vm108_vm0, %v100_v0  ;;  %118 = vst.msk [vmem:[%s323_s3 + $0x48] sm:$0xff] %vm108_vm0, %v101_v2  ;;  %v106_v1 = vmax.f32 %v90_v3, 0.0  ;;  %v107_v10 = vmax.f32 %v91_v4, 0.0 }
  0x13   :  { %119 = vst.msk [vmem:[%s323_s3 + $0x50] sm:$0xff] %vm108_vm0, %v102_v5  ;;  %120 = vst.msk [vmem:[%s323_s3 + $0x58] sm:$0xff] %vm108_vm0, %v103_v6 }
  0x14   :  { %121 = vst.msk [vmem:[%s323_s3 + $0x60] sm:$0xff] %vm108_vm0, %v104_v8  ;;  %122 = vst.msk [vmem:[%s323_s3 + $0x68] sm:$0xff] %vm108_vm0, %v105_v9 }
  0x15   :  { %123 = vst.msk [vmem:[%s323_s3 + $0x70] sm:$0xff] %vm108_vm0, %v106_v1  ;;  %124 = vst.msk [vmem:[%s323_s3 + $0x78] sm:$0xff] %vm108_vm0, %v107_v10 }

// kernel: resblock_forward.4
= control target key start
LH: loop header
LB: loop body
LE: loop exit
PB: predicated region body
PF: predicated region fallthrough
CT: control target
= control target key end

     0   :  { %vm97_vm0 = vcmask 1041408   ;;  %vm72_vm1 = vcmask 31744   ;;  %vm262_vm2 = vcmask 27648   ;;  %vm316_vm3 = vcmask 24576   ;;  %s661_s1 = inlined_call_operand.vmem [shape: bf16[4,4], index: 1, kind: input, shape index: {}]   ;;  %s662_s0 = inlined_call_operand.vmem [shape: bf16[128,4], index: 0, kind: input, shape index: {}]   ;;  %s663_s2 = inlined_call_operand.vmem [shape: bf16[128,4], index: 2, kind: output, shape index: {0}]   ;;  %s664_s3 = inlined_call_operand.vmem [shape: f32[1,1,4], index: 3, kind: output, shape index: {1}]   ;;  %s665_s4 = inlined_call_operand.vmem [shape: f32[1,1,4], index: 4, kind: output, shape index: {2}]  }
   0x1   :  { %v31_v0 = vld [vmem:[%s661_s1] sm:$0x3]  ;;  %v464_v3 = vld [vmem:[%s662_s0 + $0x8] sm:$0xff]   ;;  %v465_v4 = vld [vmem:[%s662_s0 + $0x10] sm:$0xff]  }
   0x2   :  { %461 = vmatprep.subr.msk.bf16.mxu0 %vm97_vm0, %v31_v0  ;;  %v99_v1 = vsel %vm97_vm0, %v31_v0, 0  ;;  %v463_v2 = vld [vmem:[%s662_s0] sm:$0xff]   ;;  %462 = vmatprep.subr.msk.bf16.mxu1 %vm97_vm0, %v31_v0  ;;  %v468_v6 = vld [vmem:[%s662_s0 + $0x28] sm:$0xff]   ;;  %v469_v7 = vld [vmem:[%s662_s0 + $0x30] sm:$0xff]  }
   0x3   :  { %442 = vmatpush3.bf16.msra.mxu0 %v99_v1  ;;  %460 = vmatpush3.bf16.msra.mxu1 %v99_v1  ;;  %v467_v5 = vld [vmem:[%s662_s0 + $0x20] sm:$0xff]   ;;  %v466_v8 = vld [vmem:[%s662_s0 + $0x18] sm:$0xff]  }
   0x4   :  { %443 = vmatprep.mubr.msk.bf16.mxu0 %vm72_vm1, %v463_v2  ;;  %451 = vmatprep.mubr.msk.bf16.mxu1 %vm72_vm1, %v467_v5  ;;  %v470_v9 = vld [vmem:[%s662_s0 + $0x38] sm:$0xff]  }
   0x6   :  { %444 = vmatmul.mubr.msk.bf16.vlgmr.msra.gmra.mxu0 %vm72_vm1, %v464_v3  ;;  %452 = vmatmul.mubr.msk.bf16.vlgmr.msra.gmra.mxu1 %vm72_vm1, %v468_v6 }
   0x7   :  { %447 = vmatprep.mubr.msk.bf16.mxu0 %vm72_vm1, %v465_v4  ;;  %455 = vmatprep.mubr.msk.bf16.mxu1 %vm72_vm1, %v469_v7 }
   0xe   :  { %448 = vmatmul.mubr.msk.bf16.gmra.mxu0 %vm72_vm1, %v466_v8  ;;  %456 = vmatmul.mubr.msk.bf16.gmra.mxu1 %vm72_vm1, %v470_v9 }
  0xc6   :  { %v445_v10 = vpop.f32.mrf.mxu0  ;;  %v535_v14 = vpop.f32.mrf.mxu1 }
  0xc7   :  { %v418_v11 = vpack.c.bf16 %v445_v10, %v445_v10  ;;  %v426_v16 = vpack.c.bf16 %v535_v14, %v535_v14  ;;  %v320_v20 = vmul.f32 %v445_v10, %v445_v10  ;;  %v282_v28 = vsel %vm72_vm1, %v445_v10, 0.0 }
  0xc8   :  { %v135_v12 = vpop.f32.mrf.mxu0  ;;  %v543_v19 = vpop.f32.mrf.mxu1 }
  0xc9   :  { %265 = vst.msk [vmem:[%s663_s2 + $0x8] sm:$0xf] %vm262_vm2, %v418_v11  ;;  %v416_v13 = vpack.c.bf16 %v135_v12, %v135_v12  ;;  %v318_v17 = vmul.f32 %v135_v12, %v135_v12  ;;  %273 = vst.msk [vmem:[%s663_s2 + $0x28] sm:$0xf] %vm262_vm2, %v426_v16  ;;  %v424_v22 = vpack.c.bf16 %v543_v19, %v543_v19  ;;  %v279_v23 = vsel %vm72_vm1, %v135_v12, 0.0 }
  0xca   :  { %v446_v15 = vpop.f32.mrf.mxu0  ;;  %v557_v27 = vpop.f32.mrf.mxu1  ;;  %v337_v41 = vsel %vm72_vm1, %v320_v20, 0.0  ;;  %v326_v11 = vmul.f32 %v543_v19, %v543_v19 }
  0xcb   :  { %263 = vst.msk [vmem:[%s663_s2] sm:$0xf] %vm262_vm2, %v416_v13  ;;  %v419_v18 = vpack.c.bf16 %v446_v15, %v446_v15  ;;  %271 = vst.msk [vmem:[%s663_s2 + $0x20] sm:$0xf] %vm262_vm2, %v424_v22  ;;  %v427_v31 = vpack.c.bf16 %v557_v27, %v557_v27  ;;  %v334_v32 = vsel %vm72_vm1, %v318_v17, 0.0  ;;  %v321_v33 = vmul.f32 %v446_v15, %v446_v15 }
  0xcc   :  { %v138_v21 = vpop.f32.mrf.mxu0  ;;  %v170_v36 = vpop.f32.mrf.mxu1  ;;  %v284_v42 = vsel %vm72_vm1, %v446_v15, 0.0  ;;  %v294_v17 = vsel %vm72_vm1, %v543_v19, 0.0  ;;  %v328_v22 = vmul.f32 %v535_v14, %v535_v14  ;;  %v298_v19 = vsel %vm72_vm1, %v535_v14, 0.0 }
  0xcd   :  { %266 = vst.msk [vmem:[%s663_s2 + $0xc] sm:$0xf] %vm262_vm2, %v419_v18  ;;  %v417_v24 = vpack.c.bf16 %v138_v21, %v138_v21  ;;  %v280_v25 = vsel %vm72_vm1, %v138_v21, 0.0  ;;  %v319_v26 = vmul.f32 %v138_v21, %v138_v21  ;;  %274 = vst.msk [vmem:[%s663_s2 + $0x2c] sm:$0xf] %vm262_vm2, %v427_v31  ;;  %v425_v40 = vpack.c.bf16 %v170_v36, %v170_v36 }
  0xce   :  { %v281_v29 = vadd.f32 %v280_v25, %v279_v23  ;;  %v449_v30 = vpop.f32.mrf.mxu0  ;;  %v582_v45 = vpop.f32.mrf.mxu1  ;;  %v339_v49 = vsel %vm72_vm1, %v321_v33, 0.0  ;;  %v327_v18 = vmul.f32 %v170_v36, %v170_v36  ;;  %v349_v23 = vsel %vm72_vm1, %v326_v11, 0.0 }
  0xcf   :  { %264 = vst.msk [vmem:[%s663_s2 + $0x4] sm:$0xf] %vm262_vm2, %v417_v24  ;;  %v335_v34 = vsel %vm72_vm1, %v319_v26, 0.0  ;;  %v422_v35 = vpack.c.bf16 %v449_v30, %v449_v30  ;;  %272 = vst.msk [vmem:[%s663_s2 + $0x24] sm:$0xf] %vm262_vm2, %v425_v40  ;;  %v324_v53 = vmul.f32 %v449_v30, %v449_v30  ;;  %v430_v57 = vpack.c.bf16 %v582_v45, %v582_v45 }
  0xd0   :  { %v283_v37 = vadd.f32 %v282_v28, %v281_v29  ;;  %v336_v38 = vadd.f32 %v335_v34, %v334_v32  ;;  %v151_v39 = vpop.f32.mrf.mxu0  ;;  %v183_v52 = vpop.f32.mrf.mxu1  ;;  %v290_v1 = vsel %vm72_vm1, %v449_v30, 0.0  ;;  %v296_v24 = vsel %vm72_vm1, %v170_v36, 0.0 }
  0xd1   :  { %269 = vst.msk [vmem:[%s663_s2 + $0x18] sm:$0xf] %vm262_vm2, %v422_v35  ;;  %v420_v43 = vpack.c.bf16 %v151_v39, %v151_v39  ;;  %v322_v44 = vmul.f32 %v151_v39, %v151_v39  ;;  %v286_v50 = vsel %vm72_vm1, %v151_v39, 0.0  ;;  %277 = vst.msk [vmem:[%s663_s2 + $0x38] sm:$0xf] %vm262_vm2, %v430_v57  ;;  %v428_v4 = vpack.c.bf16 %v183_v52, %v183_v52 }
  0xd2   :  { %v338_v46 = vadd.f32 %v337_v41, %v336_v38  ;;  %v285_v47 = vadd.f32 %v284_v42, %v283_v37  ;;  %v450_v48 = vpop.f32.mrf.mxu0  ;;  %v458_v62 = vpop.f32.mrf.mxu1  ;;  %v345_v9 = vsel %vm72_vm1, %v324_v53, 0.0  ;;  %v329_v28 = vmul.f32 %v557_v27, %v557_v27 }
  0xd3   :  { %267 = vst.msk [vmem:[%s663_s2 + $0x10] sm:$0xf] %vm262_vm2, %v420_v43  ;;  %v423_v51 = vpack.c.bf16 %v450_v48, %v450_v48  ;;  %v341_v58 = vsel %vm72_vm1, %v322_v44, 0.0  ;;  %v325_v2 = vmul.f32 %v450_v48, %v450_v48  ;;  %v431_v8 = vpack.c.bf16 %v458_v62, %v458_v62  ;;  %275 = vst.msk [vmem:[%s663_s2 + $0x30] sm:$0xf] %vm262_vm2, %v428_v4 }
  0xd4   :  { %v287_v54 = vadd.f32 %v286_v50, %v285_v47  ;;  %v340_v55 = vadd.f32 %v339_v49, %v338_v46  ;;  %v154_v56 = vpop.f32.mrf.mxu0  ;;  %v186_v5 = vpop.f32.mrf.mxu1  ;;  %v292_v10 = vsel %vm72_vm1, %v450_v48, 0.0  ;;  %v351_v29 = vsel %vm72_vm1, %v327_v18, 0.0 }
  0xd5   :  { %270 = vst.msk [vmem:[%s663_s2 + $0x1c] sm:$0xf] %vm262_vm2, %v423_v51  ;;  %v421_v59 = vpack.c.bf16 %v154_v56, %v154_v56  ;;  %v288_v60 = vsel %vm72_vm1, %v154_v56, 0.0  ;;  %v323_v61 = vmul.f32 %v154_v56, %v154_v56  ;;  %v429_v12 = vpack.c.bf16 %v186_v5, %v186_v5  ;;  %278 = vst.msk [vmem:[%s663_s2 + $0x3c] sm:$0xf] %vm262_vm2, %v431_v8 }
  0xd6   :  { %v342_v63 = vadd.f32 %v341_v58, %v340_v55  ;;  %v289_v0 = vadd.f32 %v288_v60, %v287_v54  ;;  %v347_v16 = vsel %vm72_vm1, %v325_v2, 0.0  ;;  %v353_v32 = vsel %vm72_vm1, %v328_v22, 0.0 }
  0xd7   :  { %268 = vst.msk [vmem:[%s663_s2 + $0x14] sm:$0xf] %vm262_vm2, %v421_v59  ;;  %v343_v3 = vsel %vm72_vm1, %v323_v61, 0.0  ;;  %276 = vst.msk [vmem:[%s663_s2 + $0x34] sm:$0xf] %vm262_vm2, %v429_v12  ;;  %v300_v33 = vsel %vm72_vm1, %v557_v27, 0.0  ;;  %v330_v34 = vmul.f32 %v183_v52, %v183_v52  ;;  %v331_v14 = vmul.f32 %v186_v5, %v186_v5 }
  0xd8   :  { %v291_v6 = vadd.f32 %v290_v1, %v289_v0  ;;  %v344_v7 = vadd.f32 %v343_v3, %v342_v63  ;;  %v355_v37 = vsel %vm72_vm1, %v329_v28, 0.0  ;;  %v302_v38 = vsel %vm72_vm1, %v183_v52, 0.0 }
  0xd9   :  { %v332_v41 = vmul.f32 %v582_v45, %v582_v45  ;;  %v357_v42 = vsel %vm72_vm1, %v330_v34, 0.0  ;;  %v304_v43 = vsel %vm72_vm1, %v186_v5, 0.0  ;;  %v306_v27 = vsel %vm72_vm1, %v582_v45, 0.0 }
  0xda   :  { %v293_v13 = vadd.f32 %v292_v10, %v291_v6  ;;  %v346_v15 = vadd.f32 %v345_v9, %v344_v7  ;;  %v333_v47 = vmul.f32 %v458_v62, %v458_v62  ;;  %v359_v48 = vsel %vm72_vm1, %v331_v14, 0.0 }
  0xdb   :  { %v361_v51 = vsel %vm72_vm1, %v332_v41, 0.0  ;;  %v308_v52 = vsel %vm72_vm1, %v458_v62, 0.0 }
  0xdc   :  { %v348_v20 = vadd.f32 %v347_v16, %v346_v15  ;;  %v295_v21 = vadd.f32 %v294_v17, %v293_v13  ;;  %v363_v55 = vsel %vm72_vm1, %v333_v47, 0.0 }
  0xde   :  { %v297_v25 = vadd.f32 %v296_v24, %v295_v21  ;;  %v350_v26 = vadd.f32 %v349_v23, %v348_v20 }
  0xe0   :  { %v299_v30 = vadd.f32 %v298_v19, %v297_v25  ;;  %v352_v31 = vadd.f32 %v351_v29, %v350_v26 }
  0xe2   :  { %v354_v35 = vadd.f32 %v353_v32, %v352_v31  ;;  %v301_v36 = vadd.f32 %v300_v33, %v299_v30 }
  0xe4   :  { %v303_v39 = vadd.f32 %v302_v38, %v301_v36  ;;  %v356_v40 = vadd.f32 %v355_v37, %v354_v35 }
  0xe6   :  { %v358_v44 = vadd.f32 %v357_v42, %v356_v40  ;;  %v305_v46 = vadd.f32 %v304_v43, %v303_v39 }
  0xe8   :  { %v307_v49 = vadd.f32 %v306_v27, %v305_v46  ;;  %v360_v50 = vadd.f32 %v359_v48, %v358_v44 }
  0xea   :  { %v309_v53 = vadd.f32 %v308_v52, %v307_v49  ;;  %v362_v54 = vadd.f32 %v361_v51, %v360_v50 }
  0xec   :  { %v310_v56 = vrot.slane %v309_v53, 4  ;;  %v364_v57 = vadd.f32 %v363_v55, %v362_v54 }
  0xee   :  { %v311_v58 = vadd.f32 %v310_v56, %v309_v53  ;;  %v365_v59 = vrot.slane %v364_v57, 4 }
  0xf0   :  { %v312_v60 = vrot.slane %v311_v58, 2  ;;  %v366_v61 = vadd.f32 %v365_v59, %v364_v57 }
  0xf2   :  { %v313_v45 = vadd.f32 %v312_v60, %v311_v58  ;;  %v367_v63 = vrot.slane %v366_v61, 2 }
  0xf4   :  { %v314_v0 = vrot.slane %v313_v45, 1  ;;  %v368_v1 = vadd.f32 %v367_v63, %v366_v61 }
  0xf6   :  { %v315_v2 = vadd.f32 %v314_v0, %v313_v45  ;;  %v369_v3 = vrot.slane %v368_v1, 1 }
  0xf8   :  { %317 = vst.msk [vmem:[%s664_s3] sm:$0x1] %vm316_vm3, %v315_v2  ;;  %v370_v62 = vadd.f32 %v369_v3, %v368_v1 }
  0xfa   :  { %371 = vst.msk [vmem:[%s665_s4] sm:$0x1] %vm316_vm3, %v370_v62 }

// kernel: resblock_forward.6
= control target key start
LH: loop header
LB: loop body
LE: loop exit
PB: predicated region body
PF: predicated region fallthrough
CT: control target
= control target key end

     0   :  { %vm212_vm0 = vcmask 1041408   ;;  %vm187_vm1 = vcmask 31744   ;;  %vm501_vm2 = vcmask 60416   ;;  %vm518_vm3 = vcmask 64512   ;;  %s1048_s5 = inlined_call_operand.vmem [shape: bf16[4,8], index: 5, kind: input, shape index: {}]   ;;  %s1049_s4 = inlined_call_operand.vmem [shape: bf16[128,4], index: 4, kind: input, shape index: {}]   ;;  %s1050_s3 = inlined_call_operand.vmem [shape: bf16[4,8], index: 3, kind: input, shape index: {}]   ;;  %s1051_s0 = inlined_call_operand.vmem [shape: bf16[128,4], index: 0, kind: input, shape index: {}]   ;;  %s1052_s1 = inlined_call_operand.vmem [shape: f32[1,4], index: 1, kind: input, shape index: {}]   ;;  %s1053_s2 = inlined_call_operand.vmem [shape: f32[1,4], index: 2, kind: input, shape index: {}]   ;;  %s1054_s6 = inlined_call_operand.vmem [shape: bf16[128,8], index: 6, kind: output, shape index: {0}]   ;;  %s1055_s7 = inlined_call_operand.vmem [shape: f32[1,1,8], index: 7, kind: output, shape index: {1}]   ;;  %s1056_s8 = inlined_call_operand.vmem [shape: f32[1,1,8], index: 8, kind: output, shape index: {2}]  }
   0x1   :  { %v146_v0 = vld [vmem:[%s1048_s5] sm:$0x3]  ;;  %v778_v3 = vld [vmem:[%s1049_s4 + $0x8] sm:$0xff]   ;;  %v779_v14 = vld [vmem:[%s1049_s4 + $0x10] sm:$0xff]   ;;  %vm556_vm4 = vcmask 57344  }
   0x2   :  { %775 = vmatprep.subr.msk.bf16.mxu0 %vm212_vm0, %v146_v0  ;;  %v214_v1 = vsel %vm212_vm0, %v146_v0, 0  ;;  %v777_v2 = vld [vmem:[%s1049_s4] sm:$0xff]   ;;  %v714_v11 = vld [vmem:[%s1051_s0 + $0x8] sm:$0xff]   ;;  %v715_v19 = vld [vmem:[%s1051_s0 + $0x10] sm:$0xff]  }
   0x3   :  { %740 = vmatpush3.bf16.msra.mxu0 %v214_v1  ;;  %v129_v4 = vld [vmem:[%s1050_s3] sm:$0x3]  ;;  %741 = vmatprep.mubr.msk.bf16.mxu0 %vm187_vm1, %v777_v2  ;;  %v688_v12 = vunpack.c.l.bf16 %v714_v11  ;;  %v689_v13 = vunpack.c.h.bf16 %v714_v11  ;;  %v716_v20 = vld [vmem:[%s1051_s0 + $0x18] sm:$0xff]   ;;  %v692_v23 = vunpack.c.l.bf16 %v715_v19  ;;  %v693_v24 = vunpack.c.h.bf16 %v715_v19  ;;  %v718_v36 = vld [vmem:[%s1051_s0 + $0x28] sm:$0xff]  }
   0x4   :  { %v683_v5 = vld [vmem:[%s1051_s0] sm:$0xff]   ;;  %776 = vmatprep.subr.msk.bf16.mxu1 %vm212_vm0, %v129_v4  ;;  %v338_v6 = vsel %vm212_vm0, %v129_v4, 0  ;;  %v780_v27 = vld [vmem:[%s1049_s4 + $0x18] sm:$0xff]   ;;  %v696_v28 = vunpack.c.l.bf16 %v716_v20  ;;  %v697_v29 = vunpack.c.h.bf16 %v716_v20  ;;  %v719_v49 = vld [vmem:[%s1051_s0 + $0x30] sm:$0xff]   ;;  %v704_v53 = vunpack.c.l.bf16 %v718_v36 }
   0x5   :  { %v684_v7 = vunpack.c.l.bf16 %v683_v5  ;;  %v685_v8 = vunpack.c.h.bf16 %v683_v5  ;;  %v853_v9 = vld [vmem:[%s1052_s1] ss:$0 sm:$0xff]  ;;  %758 = vmatpush3.bf16.msra.mxu1 %v338_v6  ;;  %v705_v57 = vunpack.c.h.bf16 %v718_v36  ;;  %v720_v58 = vld [vmem:[%s1051_s0 + $0x38] sm:$0xff]   ;;  %v708_v62 = vunpack.c.l.bf16 %v719_v49 }
   0x6   :  { %v858_v10 = vld [vmem:[%s1053_s2] ss:$0 sm:$0xff]  ;;  %742 = vmatmul.mubr.msk.bf16.vlgmr.msra.gmra.mxu0 %vm187_vm1, %v778_v3  ;;  %v68_v17 = vmul.f32 %v688_v12, %v853_v9  ;;  %v69_v18 = vmul.f32 %v689_v13, %v853_v9  ;;  %v70_v33 = vmul.f32 %v692_v23, %v853_v9  ;;  %v71_v34 = vmul.f32 %v693_v24, %v853_v9  ;;  %v782_v3 = vld [vmem:[%s1049_s4 + $0x28] sm:$0xff]   ;;  %v783_v12 = vld [vmem:[%s1049_s4 + $0x30] sm:$0xff]  }
   0x7   :  { %v66_v15 = vmul.f32 %v684_v7, %v853_v9  ;;  %v67_v16 = vmul.f32 %v685_v8, %v853_v9  ;;  %745 = vmatprep.mubr.msk.bf16.mxu0 %vm187_vm1, %v779_v14  ;;  %v717_v30 = vld [vmem:[%s1051_s0 + $0x20] sm:$0xff]   ;;  %v72_v39 = vmul.f32 %v696_v28, %v853_v9  ;;  %v73_v40 = vmul.f32 %v697_v29, %v853_v9  ;;  %v784_v24 = vld [vmem:[%s1049_s4 + $0x38] sm:$0xff]  }
   0x8   :  { %v91_v25 = vadd.f32 %v858_v10, %v68_v17  ;;  %v92_v26 = vadd.f32 %v858_v10, %v69_v18  ;;  %v781_v35 = vld [vmem:[%s1049_s4 + $0x20] sm:$0xff]   ;;  %v93_v42 = vadd.f32 %v858_v10, %v70_v33  ;;  %v94_v43 = vadd.f32 %v858_v10, %v71_v34 }
   0x9   :  { %v89_v21 = vadd.f32 %v858_v10, %v66_v15  ;;  %v90_v22 = vadd.f32 %v858_v10, %v67_v16  ;;  %v700_v44 = vunpack.c.l.bf16 %v717_v30  ;;  %v95_v46 = vadd.f32 %v858_v10, %v72_v39 }
   0xa   :  { %v107_v37 = vmax.f32 %v91_v25, 0.0  ;;  %v108_v38 = vmax.f32 %v92_v26, 0.0  ;;  %v96_v47 = vadd.f32 %v858_v10, %v73_v40  ;;  %v701_v48 = vunpack.c.h.bf16 %v717_v30 }
   0xb   :  { %v105_v31 = vmax.f32 %v89_v21, 0.0  ;;  %v106_v32 = vmax.f32 %v90_v22, 0.0  ;;  %v109_v50 = vmax.f32 %v93_v42, 0.0  ;;  %v110_v51 = vmax.f32 %v94_v43, 0.0 }
   0xc   :  { %v122_v45 = vpack.c.bf16 %v108_v38, %v107_v37  ;;  %v74_v52 = vmul.f32 %v700_v44, %v853_v9  ;;  %v111_v54 = vmax.f32 %v95_v46, 0.0  ;;  %v112_v55 = vmax.f32 %v96_v47, 0.0 }
   0xd   :  { %v121_v41 = vpack.c.bf16 %v106_v32, %v105_v31  ;;  %v75_v56 = vmul.f32 %v701_v48, %v853_v9  ;;  %v123_v59 = vpack.c.bf16 %v110_v51, %v109_v50  ;;  %v76_v61 = vmul.f32 %v704_v53, %v853_v9 }
   0xe   :  { %746 = vmatmul.mubr.msk.bf16.gmra.mxu0 %vm187_vm1, %v780_v27  ;;  %v97_v60 = vadd.f32 %v858_v10, %v74_v52  ;;  %v124_v63 = vpack.c.bf16 %v112_v55, %v111_v54  ;;  %v77_v1 = vmul.f32 %v705_v57, %v853_v9  ;;  %v709_v2 = vunpack.c.h.bf16 %v719_v49 }
   0xf   :  { %759 = vmatprep.mubr.msk.bf16.mxu1 %vm187_vm1, %v121_v41  ;;  %749 = vmatprep.mubr.msk.bf16.mxu0 %vm187_vm1, %v781_v35  ;;  %v98_v0 = vadd.f32 %v858_v10, %v75_v56  ;;  %v99_v5 = vadd.f32 %v858_v10, %v76_v61  ;;  %v78_v6 = vmul.f32 %v708_v62, %v853_v9  ;;  %v712_v7 = vunpack.c.l.bf16 %v720_v58 }
  0x10   :  { %760 = vmatmul.mubr.msk.bf16.vlgmr.msra.gmra.mxu1 %vm187_vm1, %v122_v45  ;;  %v113_v4 = vmax.f32 %v97_v60, 0.0  ;;  %v100_v11 = vadd.f32 %v858_v10, %v77_v1  ;;  %v79_v13 = vmul.f32 %v709_v2, %v853_v9  ;;  %v713_v14 = vunpack.c.h.bf16 %v720_v58 }
  0x11   :  { %763 = vmatprep.mubr.msk.bf16.mxu1 %vm187_vm1, %v123_v59  ;;  %v114_v8 = vmax.f32 %v98_v0, 0.0  ;;  %v101_v15 = vadd.f32 %v858_v10, %v78_v6  ;;  %v115_v18 = vmax.f32 %v99_v5, 0.0  ;;  %v80_v20 = vmul.f32 %v712_v7, %v853_v9 }
  0x12   :  { %v102_v17 = vadd.f32 %v858_v10, %v79_v13  ;;  %v116_v19 = vmax.f32 %v100_v11, 0.0  ;;  %v81_v21 = vmul.f32 %v713_v14, %v853_v9 }
  0x13   :  { %v125_v16 = vpack.c.bf16 %v114_v8, %v113_v4  ;;  %v117_v22 = vmax.f32 %v101_v15, 0.0  ;;  %v103_v26 = vadd.f32 %v858_v10, %v80_v20 }
  0x14   :  { %v118_v23 = vmax.f32 %v102_v17, 0.0  ;;  %v126_v25 = vpack.c.bf16 %v116_v19, %v115_v18  ;;  %v104_v27 = vadd.f32 %v858_v10, %v81_v21 }
  0x15   :  { %v119_v29 = vmax.f32 %v103_v26, 0.0 }
  0x16   :  { %750 = vmatmul.mubr.msk.bf16.gmra.mxu0 %vm187_vm1, %v782_v3  ;;  %v127_v28 = vpack.c.bf16 %v118_v23, %v117_v22  ;;  %v120_v9 = vmax.f32 %v104_v27, 0.0 }
  0x17   :  { %753 = vmatprep.mubr.msk.bf16.mxu0 %vm187_vm1, %v783_v12 }
  0x18   :  { %764 = vmatmul.mubr.msk.bf16.gmra.mxu1 %vm187_vm1, %v124_v63  ;;  %v128_v30 = vpack.c.bf16 %v120_v9, %v119_v29 }
  0x19   :  { %767 = vmatprep.mubr.msk.bf16.mxu1 %vm187_vm1, %v125_v16 }
  0x1e   :  { %754 = vmatmul.mubr.msk.bf16.gmra.mxu0 %vm187_vm1, %v784_v24 }
  0x20   :  { %768 = vmatmul.mubr.msk.bf16.gmra.mxu1 %vm187_vm1, %v126_v25 }
  0x21   :  { %771 = vmatprep.mubr.msk.bf16.mxu1 %vm187_vm1, %v127_v28 }
  0x28   :  { %772 = vmatmul.mubr.msk.bf16.gmra.mxu1 %vm187_vm1, %v128_v30 }
  0xc6   :  { %v743_v31 = vpop.f32.mrf.mxu0 }
  0xc8   :  { %v250_v32 = vpop.f32.mrf.mxu0 }
  0xca   :  { %v744_v33 = vpop.f32.mrf.mxu0 }
  0xcc   :  { %v253_v34 = vpop.f32.mrf.mxu0 }
  0xce   :  { %v747_v35 = vpop.f32.mrf.mxu0 }
  0xd0   :  { %v761_v36 = vpop.f32.mrf.mxu1  ;;  %v266_v10 = vpop.f32.mrf.mxu0 }
  0xd1   :  { %v383_v37 = vadd.f32 %v761_v36, %v743_v31 }
  0xd2   :  { %v374_v38 = vpop.f32.mrf.mxu1  ;;  %v748_v41 = vpop.f32.mrf.mxu0 }
  0xd3   :  { %v668_v39 = vpack.c.bf16 %v383_v37, %v383_v37  ;;  %v375_v40 = vadd.f32 %v374_v38, %v250_v32  ;;  %v560_v50 = vmul.f32 %v383_v37, %v383_v37  ;;  %v522_v59 = vsel %vm518_vm3, %v383_v37, 0.0 }
  0xd4   :  { %v762_v42 = vpop.f32.mrf.mxu1  ;;  %v269_v44 = vpop.f32.mrf.mxu0 }
  0xd5   :  { %504 = vst.msk [vmem:[%s1054_s6 + $0x8] sm:$0xf] %vm501_vm2, %v668_v39  ;;  %v666_v43 = vpack.c.bf16 %v375_v40, %v375_v40  ;;  %v386_v45 = vadd.f32 %v762_v42, %v744_v33  ;;  %v558_v47 = vmul.f32 %v375_v40, %v375_v40  ;;  %v519_v51 = vsel %vm518_vm3, %v375_v40, 0.0 }
  0xd6   :  { %v377_v46 = vpop.f32.mrf.mxu1  ;;  %v751_v49 = vpop.f32.mrf.mxu0  ;;  %v577_v7 = vsel %vm518_vm3, %v560_v50, 0.0 }
  0xd7   :  { %502 = vst.msk [vmem:[%s1054_s6] sm:$0xf] %vm501_vm2, %v666_v43  ;;  %v378_v48 = vadd.f32 %v377_v46, %v253_v34  ;;  %v669_v52 = vpack.c.bf16 %v386_v45, %v386_v45  ;;  %v574_v62 = vsel %vm518_vm3, %v558_v47, 0.0  ;;  %v561_v63 = vmul.f32 %v386_v45, %v386_v45 }
  0xd8   :  { %v765_v53 = vpop.f32.mrf.mxu1  ;;  %v282_v58 = vpop.f32.mrf.mxu0  ;;  %v524_v8 = vsel %vm518_vm3, %v386_v45, 0.0 }
  0xd9   :  { %v667_v54 = vpack.c.bf16 %v378_v48, %v378_v48  ;;  %v520_v55 = vsel %vm518_vm3, %v378_v48, 0.0  ;;  %v559_v56 = vmul.f32 %v378_v48, %v378_v48  ;;  %v399_v57 = vadd.f32 %v765_v53, %v747_v35  ;;  %505 = vst.msk [vmem:[%s1054_s6 + $0xc] sm:$0xf] %vm501_vm2, %v669_v52 }
  0xda   :  { %v521_v60 = vadd.f32 %v520_v55, %v519_v51  ;;  %v390_v61 = vpop.f32.mrf.mxu1  ;;  %v752_v2 = vpop.f32.mrf.mxu0  ;;  %v579_v16 = vsel %vm518_vm3, %v561_v63, 0.0 }
  0xdb   :  { %503 = vst.msk [vmem:[%s1054_s6 + $0x4] sm:$0xf] %vm501_vm2, %v667_v54  ;;  %v575_v0 = vsel %vm518_vm3, %v559_v56, 0.0  ;;  %v672_v1 = vpack.c.bf16 %v399_v57, %v399_v57  ;;  %v391_v5 = vadd.f32 %v390_v61, %v266_v10  ;;  %v564_v25 = vmul.f32 %v399_v57, %v399_v57 }
  0xdc   :  { %v523_v3 = vadd.f32 %v522_v59, %v521_v60  ;;  %v576_v4 = vadd.f32 %v575_v0, %v574_v62  ;;  %v766_v6 = vpop.f32.mrf.mxu1  ;;  %v285_v20 = vpop.f32.mrf.mxu0  ;;  %v530_v35 = vsel %vm518_vm3, %v399_v57, 0.0 }
  0xdd   :  { %508 = vst.msk [vmem:[%s1054_s6 + $0x18] sm:$0xf] %vm501_vm2, %v672_v1  ;;  %v402_v11 = vadd.f32 %v766_v6, %v748_v41  ;;  %v670_v13 = vpack.c.bf16 %v391_v5, %v391_v5  ;;  %v526_v17 = vsel %vm518_vm3, %v391_v5, 0.0  ;;  %v562_v18 = vmul.f32 %v391_v5, %v391_v5 }
  0xde   :  { %v578_v12 = vadd.f32 %v577_v7, %v576_v4  ;;  %v525_v14 = vadd.f32 %v524_v8, %v523_v3  ;;  %v393_v15 = vpop.f32.mrf.mxu1  ;;  %v755_v34 = vpop.f32.mrf.mxu0  ;;  %v585_v42 = vsel %vm518_vm3, %v564_v25, 0.0 }
  0xdf   :  { %v673_v19 = vpack.c.bf16 %v402_v11, %v402_v11  ;;  %506 = vst.msk [vmem:[%s1054_s6 + $0x10] sm:$0xf] %vm501_vm2, %v670_v13  ;;  %v394_v23 = vadd.f32 %v393_v15, %v269_v44  ;;  %v581_v26 = vsel %vm518_vm3, %v562_v18, 0.0  ;;  %v565_v36 = vmul.f32 %v402_v11, %v402_v11 }
  0xe0   :  { %v527_v21 = vadd.f32 %v526_v17, %v525_v14  ;;  %v580_v22 = vadd.f32 %v579_v16, %v578_v12  ;;  %v769_v24 = vpop.f32.mrf.mxu1  ;;  %v532_v43 = vsel %vm518_vm3, %v402_v11, 0.0 }
  0xe1   :  { %509 = vst.msk [vmem:[%s1054_s6 + $0x1c] sm:$0xf] %vm501_vm2, %v673_v19  ;;  %v415_v27 = vadd.f32 %v769_v24, %v751_v49  ;;  %v671_v29 = vpack.c.bf16 %v394_v23, %v394_v23  ;;  %v528_v9 = vsel %vm518_vm3, %v394_v23, 0.0  ;;  %v563_v30 = vmul.f32 %v394_v23, %v394_v23  ;;  %v298_v49 = vpop.f32.mrf.mxu0 }
  0xe2   :  { %v582_v28 = vadd.f32 %v581_v26, %v580_v22  ;;  %v406_v31 = vpop.f32.mrf.mxu1  ;;  %v529_v32 = vadd.f32 %v528_v9, %v527_v21  ;;  %v587_v51 = vsel %vm518_vm3, %v565_v36, 0.0 }
  0xe3   :  { %v676_v33 = vpack.c.bf16 %v415_v27, %v415_v27  ;;  %507 = vst.msk [vmem:[%s1054_s6 + $0x14] sm:$0xf] %vm501_vm2, %v671_v29  ;;  %v583_v37 = vsel %vm518_vm3, %v563_v30, 0.0  ;;  %v407_v10 = vadd.f32 %v406_v31, %v282_v58  ;;  %v568_v55 = vmul.f32 %v415_v27, %v415_v27  ;;  %v756_v1 = vpop.f32.mrf.mxu0 }
  0xe4   :  { %v770_v38 = vpop.f32.mrf.mxu1  ;;  %v531_v39 = vadd.f32 %v530_v35, %v529_v32  ;;  %v584_v40 = vadd.f32 %v583_v37, %v582_v28  ;;  %v538_v4 = vsel %vm518_vm3, %v415_v27, 0.0 }
  0xe5   :  { %512 = vst.msk [vmem:[%s1054_s6 + $0x28] sm:$0xf] %vm501_vm2, %v676_v33  ;;  %v418_v41 = vadd.f32 %v770_v38, %v752_v2  ;;  %v674_v44 = vpack.c.bf16 %v407_v10, %v407_v10  ;;  %v566_v45 = vmul.f32 %v407_v10, %v407_v10  ;;  %v534_v52 = vsel %vm518_vm3, %v407_v10, 0.0 }
  0xe6   :  { %v409_v46 = vpop.f32.mrf.mxu1  ;;  %v586_v47 = vadd.f32 %v585_v42, %v584_v40  ;;  %v533_v48 = vadd.f32 %v532_v43, %v531_v39  ;;  %v593_v14 = vsel %vm518_vm3, %v568_v55, 0.0 }
  0xe7   :  { %v677_v50 = vpack.c.bf16 %v418_v41, %v418_v41  ;;  %510 = vst.msk [vmem:[%s1054_s6 + $0x20] sm:$0xf] %vm501_vm2, %v674_v44  ;;  %v410_v53 = vadd.f32 %v409_v46, %v285_v20  ;;  %v589_v59 = vsel %vm518_vm3, %v566_v45, 0.0  ;;  %v569_v5 = vmul.f32 %v418_v41, %v418_v41  ;;  %v301_v20 = vpop.f32.mrf.mxu0 }
  0xe8   :  { %v773_v54 = vpop.f32.mrf.mxu1  ;;  %v535_v56 = vadd.f32 %v534_v52, %v533_v48  ;;  %v588_v57 = vadd.f32 %v587_v51, %v586_v47  ;;  %v540_v15 = vsel %vm518_vm3, %v418_v41, 0.0 }
  0xe9   :  { %513 = vst.msk [vmem:[%s1054_s6 + $0x2c] sm:$0xf] %vm501_vm2, %v677_v50  ;;  %v431_v58 = vadd.f32 %v773_v54, %v755_v34  ;;  %v675_v60 = vpack.c.bf16 %v410_v53, %v410_v53  ;;  %v536_v61 = vsel %vm518_vm3, %v410_v53, 0.0  ;;  %v567_v62 = vmul.f32 %v410_v53, %v410_v53 }
  0xea   :  { %v422_v63 = vpop.f32.mrf.mxu1  ;;  %v590_v0 = vadd.f32 %v589_v59, %v588_v57  ;;  %v537_v2 = vadd.f32 %v536_v61, %v535_v56  ;;  %v595_v23 = vsel %vm518_vm3, %v569_v5, 0.0 }
  0xeb   :  { %v680_v3 = vpack.c.bf16 %v431_v58, %v431_v58  ;;  %511 = vst.msk [vmem:[%s1054_s6 + $0x24] sm:$0xf] %vm501_vm2, %v675_v60  ;;  %v591_v6 = vsel %vm518_vm3, %v567_v62, 0.0  ;;  %v423_v7 = vadd.f32 %v422_v63, %v298_v49  ;;  %v572_v26 = vmul.f32 %v431_v58, %v431_v58 }
  0xec   :  { %v774_v8 = vpop.f32.mrf.mxu1  ;;  %v539_v11 = vadd.f32 %v538_v4, %v537_v2  ;;  %v592_v12 = vadd.f32 %v591_v6, %v590_v0  ;;  %v546_v34 = vsel %vm518_vm3, %v431_v58, 0.0 }
  0xed   :  { %516 = vst.msk [vmem:[%s1054_s6 + $0x38] sm:$0xf] %vm501_vm2, %v680_v3  ;;  %v434_v13 = vadd.f32 %v774_v8, %v756_v1  ;;  %v678_v16 = vpack.c.bf16 %v423_v7, %v423_v7  ;;  %v570_v17 = vmul.f32 %v423_v7, %v423_v7  ;;  %v542_v24 = vsel %vm518_vm3, %v423_v7, 0.0 }
  0xee   :  { %v425_v18 = vpop.f32.mrf.mxu1  ;;  %v594_v19 = vadd.f32 %v593_v14, %v592_v12  ;;  %v541_v21 = vadd.f32 %v540_v15, %v539_v11  ;;  %v601_v38 = vsel %vm518_vm3, %v572_v26, 0.0 }
  0xef   :  { %v681_v22 = vpack.c.bf16 %v434_v13, %v434_v13  ;;  %514 = vst.msk [vmem:[%s1054_s6 + $0x30] sm:$0xf] %vm501_vm2, %v678_v16  ;;  %v426_v25 = vadd.f32 %v425_v18, %v301_v20  ;;  %v597_v29 = vsel %vm518_vm3, %v570_v17, 0.0  ;;  %v573_v35 = vmul.f32 %v434_v13, %v434_v13 }
  0xf0   :  { %v543_v27 = vadd.f32 %v542_v24, %v541_v21  ;;  %v596_v28 = vadd.f32 %v595_v23, %v594_v19  ;;  %v548_v39 = vsel %vm518_vm3, %v434_v13, 0.0 }
  0xf1   :  { %517 = vst.msk [vmem:[%s1054_s6 + $0x3c] sm:$0xf] %vm501_vm2, %v681_v22  ;;  %v679_v9 = vpack.c.bf16 %v426_v25, %v426_v25  ;;  %v544_v30 = vsel %vm518_vm3, %v426_v25, 0.0  ;;  %v571_v31 = vmul.f32 %v426_v25, %v426_v25  ;;  %v603_v42 = vsel %vm518_vm3, %v573_v35, 0.0 }
  0xf2   :  { %v598_v32 = vadd.f32 %v597_v29, %v596_v28  ;;  %v545_v33 = vadd.f32 %v544_v30, %v543_v27 }
  0xf3   :  { %515 = vst.msk [vmem:[%s1054_s6 + $0x34] sm:$0xf] %vm501_vm2, %v679_v9  ;;  %v599_v36 = vsel %vm518_vm3, %v571_v31, 0.0 }
  0xf4   :  { %v547_v37 = vadd.f32 %v546_v34, %v545_v33  ;;  %v600_v10 = vadd.f32 %v599_v36, %v598_v32 }
  0xf6   :  { %v549_v40 = vadd.f32 %v548_v39, %v547_v37  ;;  %v602_v41 = vadd.f32 %v601_v38, %v600_v10 }
  0xf8   :  { %v550_v43 = vrot.slane %v549_v40, 4  ;;  %v604_v44 = vadd.f32 %v603_v42, %v602_v41 }
  0xfa   :  { %v551_v45 = vadd.f32 %v550_v43, %v549_v40  ;;  %v605_v46 = vrot.slane %v604_v44, 4 }
  0xfc   :  { %v552_v47 = vrot.slane %v551_v45, 2  ;;  %v606_v48 = vadd.f32 %v605_v46, %v604_v44 }
  0xfe   :  { %v553_v49 = vadd.f32 %v552_v47, %v551_v45  ;;  %v607_v50 = vrot.slane %v606_v48, 2 }
 0x100   :  { %v554_v51 = vrot.slane %v553_v49, 1  ;;  %v608_v52 = vadd.f32 %v607_v50, %v606_v48 }
 0x102   :  { %v555_v53 = vadd.f32 %v554_v51, %v553_v49  ;;  %v609_v54 = vrot.slane %v608_v52, 1 }
 0x104   :  { %557 = vst.msk [vmem:[%s1055_s7] sm:$0x1] %vm556_vm4, %v555_v53  ;;  %v610_v55 = vadd.f32 %v609_v54, %v608_v52 }
 0x106   :  { %611 = vst.msk [vmem:[%s1056_s8] sm:$0x1] %vm556_vm4, %v610_v55 }

// kernel: resblock_forward.5
= control target key start
LH: loop header
LB: loop body
LE: loop exit
PB: predicated region body
PF: predicated region fallthrough
CT: control target
= control target key end

     0   :  { %s2298_s21 = smov 0   ;;  %s2609_s0 = inlined_call_operand.vmem [shape: bf16[2,8,8,4], index: 0, kind: input, shape index: {}]   ;;  %s2610_s1 = inlined_call_operand.vmem [shape: f32[1,4], index: 1, kind: input, shape index: {}]   ;;  %s2611_s2 = inlined_call_operand.vmem [shape: f32[1,4], index: 2, kind: input, shape index: {}]   ;;  %s2612_s3 = inlined_call_operand.vmem [shape: bf16[9,4,4], index: 3, kind: input, shape index: {}]   ;;  %s2613_s4 = inlined_call_operand.vmem [shape: bf16[2,64,4], index: 4, kind: output, shape index: {0}]   ;;  %s2614_s5 = inlined_call_operand.vmem [shape: f32[2,1,4], index: 5, kind: output, shape index: {1}]   ;;  %s2615_s6 = inlined_call_operand.vmem [shape: f32[2,1,4], index: 6, kind: output, shape index: {2}]  }
   0x1 LB: > { %s1897_s22 = sadd.s32 4294967295, %s2260_s21   ;;  %p1901_p0 = scmp.ge.s32.totalorder %s2260_s21, 1  ;;  %s2260_s21 = sphi %s2298_s21, %s17_s21  }
   0x2   : > { %p217_p1 = scmp.lt.s32.totalorder %s2260_s21, 3 }
   0x4   : > { %p218_p2 = pnand %p1901_p0, %p217_p1 }
   0x5   : > { %p253_p3 = scmp.lt.s32.totalorder (!%p218_p2), %s1897_s22, 1 }
   0x6   : > { %221 = sbr.rel (%p218_p2) target bundleno = 323 (0x143), region = 36 }
   0xb   : > { %v1908_v0 = vld [vmem:[%s2612_s3 + $0x2] sm:$0x3]  ;;  %vm399_vm0 = vcmask 1043456   ;;  %vm323_vm1 = vcmask 31744   ;;  %vm325_vm2 = vcmask 25600   ;;  %v2262_v2 = vmov 0.0  }
   0xc   : > { %v374_v1 = vunpack.c.l.bf16 %v1908_v0  ;;  %324 = vst.msk [vmem:[#allocation2] sm:$0xff] %vm323_vm1, %v2262_v2  ;;  %327 = vst.msk [vmem:[#allocation2 + $0x10] sm:$0xff] %vm323_vm1, %v2262_v2  ;;  %v2334_v3 = vld [vmem:[%s2612_s3] sm:$0x3]  ;;  %v2339_v4 = vld [vmem:[%s2612_s3 + $0x4] sm:$0x3] }
   0xd   : > { %326 = vst.msk [vmem:[#allocation2 + $0x8] sm:$0x3] %vm325_vm2, %v2262_v2  ;;  %328 = vst.msk [vmem:[#allocation2 + $0x18] sm:$0x3] %vm325_vm2, %v2262_v2  ;;  %s2617_s22 = smov (!%p253_p3, %s1897_s22), 1  ;;  %v363_v5 = vunpack.c.l.bf16 %v2334_v3  ;;  %v650_v6 = vunpack.c.l.bf16 %v2339_v4  ;;  %vm1730_vm3 = vcmask 27648  }
   0xe   : > { %329 = vst.msk [vmem:[#allocation2 + $0x20] sm:$0xff] %vm323_vm1, %v2262_v2  ;;  %331 = vst.msk [vmem:[#allocation2 + $0x30] sm:$0xff] %vm323_vm1, %v2262_v2  ;;  %2243 = vmatprep.subr.msk.mxu1 %vm399_vm0, %v374_v1  ;;  %2117 = vmatprep.subr.msk.mxu0 %vm399_vm0, %v374_v1  ;;  %s2007_s29 = sshll.u32 %s2617_s22, 5  ;;  %v1906_v7 = vld [vmem:[%s2610_s1] ss:$0 sm:$0xff]  ;;  %vm1760_vm4 = vcmask 24576   ;;  %s268_s11 = scalar_lea.vmem %s2615_s6, %s2617_s22 }
   0xf   : > { %330 = vst.msk [vmem:[#allocation2 + $0x28] sm:$0x3] %vm325_vm2, %v2262_v2  ;;  %332 = vst.msk [vmem:[#allocation2 + $0x38] sm:$0x3] %vm325_vm2, %v2262_v2  ;;  %2244 = vmatpush3.msk.msra.mxu1 %vm399_vm0, %v374_v1  ;;  %2118 = vmatpush3.msk.msra.mxu0 %vm399_vm0, %v374_v1  ;;  %s257_s8 = scalar_lea.vmem %s2609_s0, %s2007_s29  ;;  %v1907_v17 = vld [vmem:[%s2611_s2] ss:$0 sm:$0xff]  ;;  %s2560_s30 = scalar_lea.vmem %s2613_s4, %s2007_s29 }
  0x10   : > { %333 = vst.msk [vmem:[#allocation2 + $0x40] sm:$0xff] %vm323_vm1, %v2262_v2  ;;  %335 = vst.msk [vmem:[#allocation2 + $0x50] sm:$0xff] %vm323_vm1, %v2262_v2  ;;  %2131 = vmatprep.subr.msk.mxu1 %vm399_vm0, %v363_v5  ;;  %2145 = vmatprep.subr.msk.mxu0 %vm399_vm0, %v650_v6  ;;  %v2033_v8 = vld [vmem:[%s257_s8 + $0x8] sm:$0xff]   ;;  %v2018_v9 = vld [vmem:[%s257_s8] sm:$0xff]  }
  0x11   : > { %334 = vst.msk [vmem:[#allocation2 + $0x48] sm:$0x3] %vm325_vm2, %v2262_v2  ;;  %336 = vst.msk [vmem:[#allocation2 + $0x58] sm:$0x3] %vm325_vm2, %v2262_v2  ;;  %v2034_v10 = vld [vmem:[%s257_s8 + $0x10] sm:$0xff]   ;;  %v2023_v12 = vunpack.c.l.bf16 %v2033_v8  ;;  %v2024_v13 = vunpack.c.h.bf16 %v2033_v8  ;;  %v2019_v14 = vunpack.c.l.bf16 %v2018_v9  ;;  %v2035_v16 = vld [vmem:[%s257_s8 + $0x18] sm:$0xff]   ;;  %v2020_v18 = vunpack.c.h.bf16 %v2018_v9  ;;  %s265_s8 = scalar_lea.vmem %s2614_s5, %s2617_s22 }
  0x12   : > { %337 = vst.msk [vmem:[#allocation2 + $0x60] sm:$0xff] %vm323_vm1, %v2262_v2  ;;  %339 = vst.msk [vmem:[#allocation2 + $0x70] sm:$0xff] %vm323_vm1, %v2262_v2  ;;  %v2027_v15 = vunpack.c.l.bf16 %v2034_v10  ;;  %v2028_v19 = vunpack.c.h.bf16 %v2034_v10  ;;  %v2031_v20 = vunpack.c.l.bf16 %v2035_v16  ;;  %v2032_v21 = vunpack.c.h.bf16 %v2035_v16  ;;  %v1937_v46 = vld [vmem:[%s2612_s3 + $0x6] sm:$0x3]  ;;  %v1947_v47 = vld [vmem:[%s2612_s3 + $0x8] sm:$0x3] }
  0x13   : > { %338 = vst.msk [vmem:[#allocation2 + $0x68] sm:$0x3] %vm325_vm2, %v2262_v2  ;;  %340 = vst.msk [vmem:[#allocation2 + $0x78] sm:$0x3] %vm325_vm2, %v2262_v2  ;;  %v296_v22 = vmul.f32 %v2024_v13, %v1906_v7  ;;  %v293_v23 = vmul.f32 %v2019_v14, %v1906_v7  ;;  %v295_v25 = vmul.f32 %v2023_v12, %v1906_v7  ;;  %v801_v51 = vunpack.c.l.bf16 %v1937_v46  ;;  %v354_v58 = vld [vmem:[#allocation2] sm:$0xff] }
  0x14   : > { %341 = vst.msk [vmem:[#allocation2 + $0x80] sm:$0xff] %vm323_vm1, %v2262_v2  ;;  %343 = vst.msk [vmem:[#allocation2 + $0x90] sm:$0xff] %vm323_vm1, %v2262_v2  ;;  %v364_v11 = vld [vmem:[#allocation2 + $0x1] sm:$0xff]  ;;  %v297_v24 = vmul.f32 %v2027_v15, %v1906_v7  ;;  %v294_v26 = vmul.f32 %v2020_v18, %v1906_v7  ;;  %v298_v27 = vmul.f32 %v2028_v19, %v1906_v7  ;;  %v952_v54 = vunpack.c.l.bf16 %v1947_v47  ;;  %v1957_v59 = vld [vmem:[%s2612_s3 + $0xa] sm:$0x3] }
  0x15   : > { %342 = vst.msk [vmem:[#allocation2 + $0x88] sm:$0x3] %vm325_vm2, %v2262_v2  ;;  %344 = vst.msk [vmem:[#allocation2 + $0x98] sm:$0x3] %vm325_vm2, %v2262_v2  ;;  %2119 = vmatprep.mubr.msk.f32.mxu0 %vm323_vm1, %v364_v11  ;;  %v299_v28 = vmul.f32 %v2031_v20, %v1906_v7  ;;  %v300_v29 = vmul.f32 %v2032_v21, %v1906_v7  ;;  %v310_v30 = vadd.f32 %v1907_v17, %v296_v22  ;;  %v640_v57 = vld [vmem:[#allocation2 + $0x2] sm:$0xff] }
  0x16   : > { %v307_v31 = vadd.f32 %v1907_v17, %v293_v23  ;;  %v311_v32 = vadd.f32 %v1907_v17, %v297_v24  ;;  %v309_v33 = vadd.f32 %v1907_v17, %v295_v25  ;;  %v308_v34 = vadd.f32 %v1907_v17, %v294_v26  ;;  %v1967_v61 = vld [vmem:[%s2612_s3 + $0xc] sm:$0x3]  ;;  %v1977_v13 = vld [vmem:[%s2612_s3 + $0xe] sm:$0x3]  ;;  %v1987_v14 = vld [vmem:[%s2612_s3 + $0x10] sm:$0x3] }
  0x17   : > { %v312_v35 = vadd.f32 %v1907_v17, %v298_v27  ;;  %v313_v36 = vadd.f32 %v1907_v17, %v299_v28  ;;  %v314_v37 = vadd.f32 %v1907_v17, %v300_v29  ;;  %v318_v38 = vmax.f32 %v310_v30, 0.0 }
  0x18   : > { %v315_v39 = vmax.f32 %v307_v31, 0.0  ;;  %v319_v40 = vmax.f32 %v311_v32, 0.0  ;;  %v317_v41 = vmax.f32 %v309_v33, 0.0  ;;  %v316_v42 = vmax.f32 %v308_v34, 0.0 }
  0x19   : > { %v320_v43 = vmax.f32 %v312_v35, 0.0  ;;  %v321_v44 = vmax.f32 %v313_v36, 0.0  ;;  %v322_v45 = vmax.f32 %v314_v37, 0.0  ;;  %349 = vst.msk [vmem:[#allocation2 + $0x41] sm:$0xff] %vm323_vm1, %v318_v38  ;;  %v1103_v0 = vunpack.c.l.bf16 %v1957_v59 }
  0x1a   : > { %346 = vst.msk [vmem:[#allocation2 + $0x11] sm:$0xff] %vm323_vm1, %v315_v39  ;;  %350 = vst.msk [vmem:[#allocation2 + $0x51] sm:$0xff] %vm323_vm1, %v319_v40  ;;  %v1255_v2 = vunpack.c.l.bf16 %v1967_v61  ;;  %v1406_v15 = vunpack.c.l.bf16 %v1977_v13  ;;  %v1557_v16 = vunpack.c.l.bf16 %v1987_v14 }
  0x1b   : > { %348 = vst.msk [vmem:[#allocation2 + $0x31] sm:$0xff] %vm323_vm1, %v317_v41  ;;  %347 = vst.msk [vmem:[#allocation2 + $0x21] sm:$0xff] %vm323_vm1, %v316_v42  ;;  %v1252_v19 = vld [vmem:[#allocation2 + $0x90] sm:$0xff] }
  0x1c   : > { %351 = vst.msk [vmem:[#allocation2 + $0x61] sm:$0xff] %vm323_vm1, %v320_v43  ;;  %352 = vst.msk [vmem:[#allocation2 + $0x71] sm:$0xff] %vm323_vm1, %v321_v44  ;;  %v1554_v21 = vld [vmem:[#allocation2 + $0x92] sm:$0xff] }
  0x1d   : > { %353 = vst.msk [vmem:[#allocation2 + $0x81] sm:$0xff] %vm323_vm1, %v322_v45  ;;  %v1403_v22 = vld [vmem:[#allocation2 + $0x91] sm:$0xff] }
  0x20   : > { %v2384_v48 = vld [vmem:[#allocation2 + $0x41] sm:$0xff] }
  0x21   : > { %v365_v49 = vld [vmem:[#allocation2 + $0x11] sm:$0xff]  ;;  %2125 = vmatprep.mubr.msk.f32.mxu1 %vm323_vm1, %v2384_v48 }
  0x22   : > { %v2386_v50 = vld [vmem:[#allocation2 + $0x51] sm:$0xff]  ;;  %2120 = vmatmul.mubr.msk.f32.vlgmr.msra.gmra.mxu0 %vm323_vm1, %v365_v49  ;;  %v2391_v52 = vld [vmem:[#allocation2 + $0x21] sm:$0xff] }
  0x23   : > { %v2393_v53 = vld [vmem:[#allocation2 + $0x61] sm:$0xff]  ;;  %2126 = vmatmul.mubr.msk.f32.vlgmr.msra.gmra.mxu1 %vm323_vm1, %v2386_v50  ;;  %2146 = vmatpush3.msk.msra.mxu0 %vm399_vm0, %v650_v6  ;;  %v2400_v55 = vld [vmem:[#allocation2 + $0x31] sm:$0xff] }
  0x24   : > { %2132 = vmatpush3.msk.msra.mxu1 %vm399_vm0, %v363_v5  ;;  %2122 = vmatprep.mubr.msk.f32.mxu0 %vm323_vm1, %v2391_v52  ;;  %v2407_v56 = vld [vmem:[#allocation2 + $0x71] sm:$0xff]  ;;  %v356_v63 = vld [vmem:[#allocation2 + $0x20] sm:$0xff] }
  0x25   : > { %2128 = vmatprep.mubr.msk.f32.mxu1 %vm323_vm1, %v2393_v53  ;;  %2159 = vmatprep.subr.msk.mxu1 %vm399_vm0, %v801_v51  ;;  %v2421_v60 = vld [vmem:[#allocation2 + $0x12] sm:$0xff]  ;;  %v2429_v1 = vld [vmem:[#allocation2 + $0x22] sm:$0xff] }
  0x26   : > { %2123 = vmatmul.mubr.msk.f32.gmra.mxu0 %vm323_vm1, %v2400_v55  ;;  %2173 = vmatprep.subr.msk.mxu0 %vm399_vm0, %v952_v54  ;;  %v355_v62 = vld [vmem:[#allocation2 + $0x10] sm:$0xff]  ;;  %v2437_v5 = vld [vmem:[#allocation2 + $0x42] sm:$0xff] }
  0x27   : > { %2129 = vmatmul.mubr.msk.f32.gmra.mxu1 %vm323_vm1, %v2407_v56  ;;  %2147 = vmatprep.mubr.msk.f32.mxu0 %vm323_vm1, %v640_v57  ;;  %v2433_v3 = vld [vmem:[#allocation2 + $0x32] sm:$0xff]  ;;  %v358_v6 = vld [vmem:[#allocation2 + $0x40] sm:$0xff] }
  0x28   : > { %2133 = vmatprep.mubr.msk.f32.mxu1 %vm323_vm1, %v354_v58  ;;  %v357_v4 = vld [vmem:[#allocation2 + $0x30] sm:$0xff]  ;;  %v2451_v9 = vld [vmem:[#allocation2 + $0x62] sm:$0xff] }
  0x29   : > { %v2448_v7 = vld [vmem:[#allocation2 + $0x52] sm:$0xff]  ;;  %v360_v10 = vld [vmem:[#allocation2 + $0x60] sm:$0xff] }
  0x2a   : > { %2148 = vmatmul.mubr.msk.f32.vlgmr.msra.gmra.mxu0 %vm323_vm1, %v2421_v60  ;;  %v359_v8 = vld [vmem:[#allocation2 + $0x50] sm:$0xff]  ;;  %v949_v17 = vld [vmem:[#allocation2 + $0x81] sm:$0xff] }
  0x2b   : > { %2134 = vmatmul.mubr.msk.f32.vlgmr.msra.gmra.mxu1 %vm323_vm1, %v355_v62  ;;  %2174 = vmatpush3.msk.msra.mxu0 %vm399_vm0, %v952_v54  ;;  %v647_v11 = vld [vmem:[#allocation2 + $0x72] sm:$0xff]  ;;  %v798_v18 = vld [vmem:[#allocation2 + $0x80] sm:$0xff] }
  0x2c   : > { %2160 = vmatpush3.msk.msra.mxu1 %vm399_vm0, %v801_v51  ;;  %2136 = vmatprep.mubr.msk.f32.mxu1 %vm323_vm1, %v356_v63  ;;  %v361_v12 = vld [vmem:[#allocation2 + $0x70] sm:$0xff]  ;;  %v1100_v20 = vld [vmem:[#allocation2 + $0x82] sm:$0xff] }
  0x2d   : > { %2150 = vmatprep.mubr.msk.f32.mxu0 %vm323_vm1, %v2429_v1  ;;  %2187 = vmatprep.subr.msk.mxu1 %vm399_vm0, %v1103_v0 }
  0x2e   : > { %2151 = vmatmul.mubr.msk.f32.gmra.mxu0 %vm323_vm1, %v2433_v3  ;;  %2201 = vmatprep.subr.msk.mxu0 %vm399_vm0, %v1255_v2 }
  0x2f   : > { %2137 = vmatmul.mubr.msk.f32.gmra.mxu1 %vm323_vm1, %v357_v4  ;;  %2153 = vmatprep.mubr.msk.f32.mxu0 %vm323_vm1, %v2437_v5 }
  0x30   : > { %2139 = vmatprep.mubr.msk.f32.mxu1 %vm323_vm1, %v358_v6 }
  0x32   : > { %2154 = vmatmul.mubr.msk.f32.gmra.mxu0 %vm323_vm1, %v2448_v7 }
  0x33   : > { %2140 = vmatmul.mubr.msk.f32.gmra.mxu1 %vm323_vm1, %v359_v8  ;;  %2156 = vmatprep.mubr.msk.f32.mxu0 %vm323_vm1, %v2451_v9 }
  0x34   : > { %2142 = vmatprep.mubr.msk.f32.mxu1 %vm323_vm1, %v360_v10 }
  0x36   : > { %2157 = vmatmul.mubr.msk.f32.gmra.mxu0 %vm323_vm1, %v647_v11 }
  0x37   : > { %2143 = vmatmul.mubr.msk.f32.gmra.mxu1 %vm323_vm1, %v361_v12  ;;  %2175 = vmatprep.mubr.msk.f32.mxu0 %vm323_vm1, %v365_v49 }
  0x38   : > { %2161 = vmatprep.mubr.msk.f32.mxu1 %vm323_vm1, %v355_v62 }
  0x3a   : > { %2176 = vmatmul.mubr.msk.f32.vlgmr.msra.gmra.mxu0 %vm323_vm1, %v2391_v52 }
  0x3b   : > { %2162 = vmatmul.mubr.msk.f32.vlgmr.msra.gmra.mxu1 %vm323_vm1, %v356_v63  ;;  %2202 = vmatpush3.msk.msra.mxu0 %vm399_vm0, %v1255_v2 }
  0x3c   : > { %2188 = vmatpush3.msk.msra.mxu1 %vm399_vm0, %v1103_v0  ;;  %2164 = vmatprep.mubr.msk.f32.mxu1 %vm323_vm1, %v357_v4 }
  0x3d   : > { %2178 = vmatprep.mubr.msk.f32.mxu0 %vm323_vm1, %v2400_v55  ;;  %2215 = vmatprep.subr.msk.mxu1 %vm399_vm0, %v1406_v15 }
  0x3e   : > { %2179 = vmatmul.mubr.msk.f32.gmra.mxu0 %vm323_vm1, %v2384_v48  ;;  %2229 = vmatprep.subr.msk.mxu0 %vm399_vm0, %v1557_v16 }
  0x3f   : > { %2165 = vmatmul.mubr.msk.f32.gmra.mxu1 %vm323_vm1, %v358_v6  ;;  %2181 = vmatprep.mubr.msk.f32.mxu0 %vm323_vm1, %v2386_v50 }
  0x40   : > { %2167 = vmatprep.mubr.msk.f32.mxu1 %vm323_vm1, %v359_v8 }
  0x42   : > { %2182 = vmatmul.mubr.msk.f32.gmra.mxu0 %vm323_vm1, %v2393_v53 }
  0x43   : > { %2168 = vmatmul.mubr.msk.f32.gmra.mxu1 %vm323_vm1, %v360_v10  ;;  %2184 = vmatprep.mubr.msk.f32.mxu0 %vm323_vm1, %v2407_v56 }
  0x44   : > { %2170 = vmatprep.mubr.msk.f32.mxu1 %vm323_vm1, %v361_v12 }
  0x46   : > { %2185 = vmatmul.mubr.msk.f32.gmra.mxu0 %vm323_vm1, %v949_v17 }
  0x47   : > { %2171 = vmatmul.mubr.msk.f32.gmra.mxu1 %vm323_vm1, %v798_v18  ;;  %2203 = vmatprep.mubr.msk.f32.mxu0 %vm323_vm1, %v356_v63 }
  0x48   : > { %2189 = vmatprep.mubr.msk.f32.mxu1 %vm323_vm1, %v2421_v60 }
  0x4a   : > { %2204 = vmatmul.mubr.msk.f32.vlgmr.msra.gmra.mxu0 %vm323_vm1, %v357_v4 }
  0x4b   : > { %2190 = vmatmul.mubr.msk.f32.vlgmr.msra.gmra.mxu1 %vm323_vm1, %v2429_v1  ;;  %2230 = vmatpush3.msk.msra.mxu0 %vm399_vm0, %v1557_v16 }
  0x4c   : > { %2216 = vmatpush3.msk.msra.mxu1 %vm399_vm0, %v1406_v15  ;;  %2192 = vmatprep.mubr.msk.f32.mxu1 %vm323_vm1, %v2433_v3 }
  0x4d   : > { %2206 = vmatprep.mubr.msk.f32.mxu0 %vm323_vm1, %v358_v6 }
  0x4e   : > { %2207 = vmatmul.mubr.msk.f32.gmra.mxu0 %vm323_vm1, %v359_v8 }
  0x4f   : > { %2193 = vmatmul.mubr.msk.f32.gmra.mxu1 %vm323_vm1, %v2437_v5  ;;  %2209 = vmatprep.mubr.msk.f32.mxu0 %vm323_vm1, %v360_v10 }
  0x50   : > { %2195 = vmatprep.mubr.msk.f32.mxu1 %vm323_vm1, %v2448_v7 }
  0x52   : > { %2210 = vmatmul.mubr.msk.f32.gmra.mxu0 %vm323_vm1, %v361_v12 }
  0x53   : > { %2196 = vmatmul.mubr.msk.f32.gmra.mxu1 %vm323_vm1, %v2451_v9  ;;  %2212 = vmatprep.mubr.msk.f32.mxu0 %vm323_vm1, %v798_v18 }
  0x54   : > { %2198 = vmatprep.mubr.msk.f32.mxu1 %vm323_vm1, %v647_v11 }
  0x56   : > { %2213 = vmatmul.mubr.msk.f32.gmra.mxu0 %vm323_vm1, %v1252_v19 }
  0x57   : > { %2199 = vmatmul.mubr.msk.f32.gmra.mxu1 %vm323_vm1, %v1100_v20  ;;  %2231 = vmatprep.mubr.msk.f32.mxu0 %vm323_vm1, %v2429_v1 }
  0x58   : > { %2217 = vmatprep.mubr.msk.f32.mxu1 %vm323_vm1, %v2391_v52 }
  0x5a   : > { %2232 = vmatmul.mubr.msk.f32.vlgmr.msra.gmra.mxu0 %vm323_vm1, %v2433_v3 }
  0x5b   : > { %2218 = vmatmul.mubr.msk.f32.vlgmr.msra.gmra.mxu1 %vm323_vm1, %v2400_v55  ;;  %2234 = vmatprep.mubr.msk.f32.mxu0 %vm323_vm1, %v2437_v5 }
  0x5c   : > { %2220 = vmatprep.mubr.msk.f32.mxu1 %vm323_vm1, %v2384_v48 }
  0x5e   : > { %2235 = vmatmul.mubr.msk.f32.gmra.mxu0 %vm323_vm1, %v2448_v7 }
  0x5f   : > { %2221 = vmatmul.mubr.msk.f32.gmra.mxu1 %vm323_vm1, %v2386_v50  ;;  %2237 = vmatprep.mubr.msk.f32.mxu0 %vm323_vm1, %v2451_v9 }
  0x60   : > { %2223 = vmatprep.mubr.msk.f32.mxu1 %vm323_vm1, %v2393_v53 }
  0x62   : > { %2238 = vmatmul.mubr.msk.f32.gmra.mxu0 %vm323_vm1, %v647_v11 }
  0x63   : > { %2224 = vmatmul.mubr.msk.f32.gmra.mxu1 %vm323_vm1, %v2407_v56  ;;  %2240 = vmatprep.mubr.msk.f32.mxu0 %vm323_vm1, %v1100_v20 }
  0x64   : > { %2226 = vmatprep.mubr.msk.f32.mxu1 %vm323_vm1, %v949_v17 }
  0x66   : > { %2241 = vmatmul.mubr.msk.f32.gmra.mxu0 %vm323_vm1, %v1554_v21 }
  0x67   : > { %2227 = vmatmul.mubr.msk.f32.gmra.mxu1 %vm323_vm1, %v1403_v22 }
  0xe2   : > { %v2121_v23 = vpop.f32.mrf.mxu0 }
  0xe3   : > { %v2127_v24 = vpop.f32.mrf.mxu1 }
  0xe4   : > { %v469_v25 = vpop.f32.mrf.mxu0 }
  0xe5   : > { %v489_v26 = vpop.f32.mrf.mxu1 }
  0xe6   : > { %v2124_v27 = vpop.f32.mrf.mxu0 }
  0xe7   : > { %v2130_v28 = vpop.f32.mrf.mxu1 }
  0xe8   : > { %v479_v29 = vpop.f32.mrf.mxu0 }
  0xe9   : > { %v2544_v30 = vpop.f32.mrf.mxu1 }
  0xea   : > { %v2149_v31 = vpop.f32.mrf.mxu0 }
  0xeb   : > { %v2135_v32 = vpop.f32.mrf.mxu1 }
  0xec   : > { %v744_v33 = vpop.f32.mrf.mxu0  ;;  %v607_v63 = vadd.f32 %v2135_v32, %v2121_v23 }
  0xed   : > { %v601_v34 = vpop.f32.mrf.mxu1 }
  0xee   : > { %v2152_v35 = vpop.f32.mrf.mxu0  ;;  %v602_v2 = vadd.f32 %v601_v34, %v469_v25  ;;  %v784_v5 = vadd.f32 %v2149_v31, %v607_v63 }
  0xef   : > { %v2138_v36 = vpop.f32.mrf.mxu1 }
  0xf0   : > { %v754_v37 = vpop.f32.mrf.mxu0  ;;  %v617_v7 = vadd.f32 %v2138_v36, %v2124_v27  ;;  %v783_v9 = vadd.f32 %v744_v33, %v602_v2 }
  0xf1   : > { %v611_v38 = vpop.f32.mrf.mxu1 }
  0xf2   : > { %v2155_v39 = vpop.f32.mrf.mxu0  ;;  %v612_v12 = vadd.f32 %v611_v38, %v479_v29  ;;  %v786_v17 = vadd.f32 %v2152_v35, %v617_v7 }
  0xf3   : > { %v2141_v40 = vpop.f32.mrf.mxu1 }
  0xf4   : > { %v764_v41 = vpop.f32.mrf.mxu0  ;;  %v627_v14 = vadd.f32 %v2141_v40, %v2127_v24  ;;  %v785_v22 = vadd.f32 %v754_v37, %v612_v12 }
  0xf5   : > { %v621_v42 = vpop.f32.mrf.mxu1 }
  0xf6   : > { %v2158_v43 = vpop.f32.mrf.mxu0  ;;  %v622_v19 = vadd.f32 %v621_v42, %v489_v26  ;;  %v788_v31 = vadd.f32 %v2155_v39, %v627_v14 }
  0xf7   : > { %v2144_v44 = vpop.f32.mrf.mxu1 }
  0xf8   : > { %v774_v45 = vpop.f32.mrf.mxu0  ;;  %v637_v27 = vadd.f32 %v2144_v44, %v2130_v28  ;;  %v787_v38 = vadd.f32 %v764_v41, %v622_v19 }
  0xf9   : > { %v631_v46 = vpop.f32.mrf.mxu1 }
  0xfa   : > { %v2177_v47 = vpop.f32.mrf.mxu0  ;;  %v632_v29 = vadd.f32 %v631_v46, %v2544_v30 }
  0xfb   : > { %v2163_v48 = vpop.f32.mrf.mxu1 }
  0xfc   : > { %v1046_v49 = vpop.f32.mrf.mxu0  ;;  %v935_v10 = vadd.f32 %v2163_v48, %v784_v5  ;;  %v790_v48 = vadd.f32 %v2158_v43, %v637_v27  ;;  %v789_v39 = vadd.f32 %v774_v45, %v632_v29 }
  0xfd   : > { %v895_v50 = vpop.f32.mrf.mxu1 }
  0xfe   : > { %v2180_v51 = vpop.f32.mrf.mxu0  ;;  %v934_v15 = vadd.f32 %v895_v50, %v783_v9  ;;  %v1086_v20 = vadd.f32 %v2177_v47, %v935_v10 }
  0xff   : > { %v2166_v52 = vpop.f32.mrf.mxu1 }
 0x100   : > { %v1056_v53 = vpop.f32.mrf.mxu0  ;;  %v937_v23 = vadd.f32 %v2166_v52, %v786_v17  ;;  %v1085_v32 = vadd.f32 %v1046_v49, %v934_v15 }
 0x101   : > { %v905_v54 = vpop.f32.mrf.mxu1 }
 0x102   : > { %v2183_v55 = vpop.f32.mrf.mxu0  ;;  %v936_v24 = vadd.f32 %v905_v54, %v785_v22  ;;  %v1088_v42 = vadd.f32 %v2180_v51, %v937_v23 }
 0x103   : > { %v2169_v56 = vpop.f32.mrf.mxu1 }
 0x104   : > { %v1066_v57 = vpop.f32.mrf.mxu0  ;;  %v939_v35 = vadd.f32 %v2169_v56, %v788_v31  ;;  %v1087_v28 = vadd.f32 %v1056_v53, %v936_v24 }
 0x105   : > { %v915_v58 = vpop.f32.mrf.mxu1 }
 0x106   : > { %v2546_v59 = vpop.f32.mrf.mxu0  ;;  %v938_v37 = vadd.f32 %v915_v58, %v787_v38  ;;  %v1090_v63 = vadd.f32 %v2183_v55, %v939_v35 }
 0x107   : > { %v2172_v60 = vpop.f32.mrf.mxu1 }
 0x108   : > { %v2548_v61 = vpop.f32.mrf.mxu0 }
 0x109   : > { %v925_v62 = vpop.f32.mrf.mxu1 }
 0x10a   : > { %v2205_v0 = vpop.f32.mrf.mxu0  ;;  %v940_v41 = vadd.f32 %v925_v62, %v789_v39 }
 0x10b   : > { %v2191_v1 = vpop.f32.mrf.mxu1 }
 0x10c   : > { %v1349_v3 = vpop.f32.mrf.mxu0  ;;  %v1237_v33 = vadd.f32 %v2191_v1, %v1086_v20  ;;  %v941_v1 = vadd.f32 %v2172_v60, %v790_v48 }
 0x10d   : > { %v1197_v4 = vpop.f32.mrf.mxu1 }
 0x10e   : > { %v2208_v6 = vpop.f32.mrf.mxu0  ;;  %v1236_v40 = vadd.f32 %v1197_v4, %v1085_v32  ;;  %v1389_v50 = vadd.f32 %v2205_v0, %v1237_v33  ;;  %v1089_v4 = vadd.f32 %v1066_v57, %v938_v37  ;;  %v1092_v53 = vadd.f32 %v2546_v59, %v941_v1 }
 0x10f   : > { %v2194_v8 = vpop.f32.mrf.mxu1 }
 0x110   : > { %v1359_v11 = vpop.f32.mrf.mxu0  ;;  %v1239_v44 = vadd.f32 %v2194_v8, %v1088_v42  ;;  %v1388_v30 = vadd.f32 %v1349_v3, %v1236_v40  ;;  %v1091_v3 = vadd.f32 %v2548_v61, %v940_v41 }
 0x111   : > { %v1207_v13 = vpop.f32.mrf.mxu1 }
 0x112   : > { %v2211_v16 = vpop.f32.mrf.mxu0  ;;  %v1238_v56 = vadd.f32 %v1207_v13, %v1087_v28  ;;  %v1391_v0 = vadd.f32 %v2208_v6, %v1239_v44 }
 0x113   : > { %v2197_v18 = vpop.f32.mrf.mxu1 }
 0x114   : > { %v2550_v21 = vpop.f32.mrf.mxu0  ;;  %v1241_v51 = vadd.f32 %v2197_v18, %v1090_v63  ;;  %v1390_v7 = vadd.f32 %v1359_v11, %v1238_v56 }
 0x115   : > { %v1217_v25 = vpop.f32.mrf.mxu1 }
 0x116   : > { %v2552_v34 = vpop.f32.mrf.mxu0  ;;  %v1240_v55 = vadd.f32 %v1217_v25, %v1089_v4  ;;  %v1393_v9 = vadd.f32 %v2211_v16, %v1241_v51 }
 0x117   : > { %v2200_v36 = vpop.f32.mrf.mxu1 }
 0x118   : > { %v1379_v26 = vpop.f32.mrf.mxu0  ;;  %v1243_v10 = vadd.f32 %v2200_v36, %v1092_v53  ;;  %v1392_v20 = vadd.f32 %v2550_v21, %v1240_v55 }
 0x119   : > { %v1227_v47 = vpop.f32.mrf.mxu1 }
 0x11a   : > { %v2233_v52 = vpop.f32.mrf.mxu0  ;;  %v1242_v15 = vadd.f32 %v1227_v47, %v1091_v3  ;;  %v1395_v24 = vadd.f32 %v2552_v34, %v1243_v10 }
 0x11b   : > { %v2219_v49 = vpop.f32.mrf.mxu1 }
 0x11c   : > { %v1540_v46 = vadd.f32 %v2219_v49, %v1389_v50  ;;  %v1651_v54 = vpop.f32.mrf.mxu0  ;;  %v1394_v21 = vadd.f32 %v1379_v26, %v1242_v15 }
 0x11d   : > { %v1500_v2 = vpop.f32.mrf.mxu1 }
 0x11e   : > { %v1691_v5 = vadd.f32 %v2233_v52, %v1540_v46  ;;  %v1539_v43 = vadd.f32 %v1500_v2, %v1388_v30  ;;  %v2236_v58 = vpop.f32.mrf.mxu0 }
 0x11f   : > { %v2222_v45 = vpop.f32.mrf.mxu1 }
 0x120   : > { %v2010_v60 = vpack.c.bf16 %v1691_v5, %v1691_v5  ;;  %v1690_v62 = vadd.f32 %v1651_v54, %v1539_v43  ;;  %v1661_v57 = vpop.f32.mrf.mxu0  ;;  %v1542_v6 = vadd.f32 %v2222_v45, %v1391_v0  ;;  %v1763_v17 = vmul.f32 %v1691_v5, %v1691_v5 }
 0x121   : > { %v1510_v8 = vpop.f32.mrf.mxu1  ;;  %v1740_v22 = vsel %vm323_vm1, %v1691_v5, 0.0 }
 0x122   : > { %1732 = vst.msk [vmem:[%s2560_s30 + $0x4] sm:$0xf] %vm1730_vm3, %v2010_v60  ;;  %v2009_v12 = vpack.c.bf16 %v1690_v62, %v1690_v62  ;;  %v1762_v13 = vmul.f32 %v1690_v62, %v1690_v62  ;;  %v2239_v14 = vpop.f32.mrf.mxu0  ;;  %v1693_v59 = vadd.f32 %v2236_v58, %v1542_v6  ;;  %v1541_v18 = vadd.f32 %v1510_v8, %v1390_v7 }
 0x123   : > { %v2225_v19 = vpop.f32.mrf.mxu1  ;;  %v1739_v61 = vsel %vm323_vm1, %v1690_v62, 0.0  ;;  %v1771_v36 = vsel %vm323_vm1, %v1763_v17, 0.0 }
 0x124   : > { %1731 = vst.msk [vmem:[%s2560_s30] sm:$0xf] %vm1730_vm3, %v2009_v12  ;;  %v1544_v11 = vadd.f32 %v2225_v19, %v1393_v9  ;;  %v1671_v16 = vpop.f32.mrf.mxu0  ;;  %v1770_v23 = vsel %vm323_vm1, %v1762_v13, 0.0  ;;  %v2012_v25 = vpack.c.bf16 %v1693_v59, %v1693_v59  ;;  %v1765_v27 = vmul.f32 %v1693_v59, %v1693_v59 }
 0x125   : > { %v1520_v31 = vpop.f32.mrf.mxu1  ;;  %v1692_v32 = vadd.f32 %v1661_v57, %v1541_v18  ;;  %v1741_v38 = vadd.f32 %v1740_v22, %v1739_v61  ;;  %v1772_v50 = vadd.f32 %v1771_v36, %v1770_v23  ;;  %v1744_v52 = vsel %vm323_vm1, %v1693_v59, 0.0 }
 0x126   : > { %v1695_v33 = vadd.f32 %v2239_v14, %v1544_v11  ;;  %v1543_v29 = vadd.f32 %v1520_v31, %v1392_v20  ;;  %1734 = vst.msk [vmem:[%s2560_s30 + $0xc] sm:$0xf] %vm1730_vm3, %v2012_v25  ;;  %v2242_v40 = vpop.f32.mrf.mxu0  ;;  %v1775_v28 = vsel %vm323_vm1, %v1765_v27, 0.0 }
 0x127   : > { %v2228_v35 = vpop.f32.mrf.mxu1  ;;  %v2011_v42 = vpack.c.bf16 %v1692_v32, %v1692_v32  ;;  %v1742_v47 = vsel %vm323_vm1, %v1692_v32, 0.0  ;;  %v1764_v48 = vmul.f32 %v1692_v32, %v1692_v32 }
 0x128   : > { %v2014_v37 = vpack.c.bf16 %v1695_v33, %v1695_v33  ;;  %v1743_v39 = vadd.f32 %v1742_v47, %v1741_v38  ;;  %v1694_v34 = vadd.f32 %v1671_v16, %v1543_v29  ;;  %v1546_v49 = vadd.f32 %v2228_v35, %v1395_v24  ;;  %v1681_v41 = vpop.f32.mrf.mxu0 }
 0x129   : > { %v1530_v26 = vpop.f32.mrf.mxu1  ;;  %1733 = vst.msk [vmem:[%s2560_s30 + $0x8] sm:$0xf] %vm1730_vm3, %v2011_v42  ;;  %v1773_v44 = vsel %vm323_vm1, %v1764_v48, 0.0  ;;  %v1767_v30 = vmul.f32 %v1695_v33, %v1695_v33  ;;  %v1748_v58 = vsel %vm323_vm1, %v1695_v33, 0.0 }
 0x12a   : > { %1736 = vst.msk [vmem:[%s2560_s30 + $0x14] sm:$0xf] %vm1730_vm3, %v2014_v37  ;;  %v1545_v63 = vadd.f32 %v1530_v26, %v1394_v21  ;;  %v1774_v1 = vadd.f32 %v1773_v44, %v1772_v50  ;;  %v2013_v46 = vpack.c.bf16 %v1694_v34, %v1694_v34  ;;  %v1745_v54 = vadd.f32 %v1744_v52, %v1743_v39 }
 0x12b   : > { %v1746_v56 = vsel %vm323_vm1, %v1694_v34, 0.0  ;;  %v1766_v2 = vmul.f32 %v1694_v34, %v1694_v34  ;;  %v1697_v4 = vadd.f32 %v2242_v40, %v1546_v49  ;;  %v1779_v57 = vsel %vm323_vm1, %v1767_v30, 0.0 }
 0x12c   : > { %v1696_v51 = vadd.f32 %v1681_v41, %v1545_v63  ;;  %1735 = vst.msk [vmem:[%s2560_s30 + $0x10] sm:$0xf] %vm1730_vm3, %v2013_v46  ;;  %v1747_v5 = vadd.f32 %v1746_v56, %v1745_v54  ;;  %v1776_v43 = vadd.f32 %v1775_v28, %v1774_v1 }
 0x12d   : > { %v1777_v0 = vsel %vm323_vm1, %v1766_v2, 0.0  ;;  %v2016_v45 = vpack.c.bf16 %v1697_v4, %v1697_v4  ;;  %v1769_v3 = vmul.f32 %v1697_v4, %v1697_v4  ;;  %v1752_v9 = vsel %vm323_vm1, %v1697_v4, 0.0 }
 0x12e   : > { %v1778_v53 = vadd.f32 %v1777_v0, %v1776_v43  ;;  %v2015_v55 = vpack.c.bf16 %v1696_v51, %v1696_v51  ;;  %v1749_v60 = vadd.f32 %v1748_v58, %v1747_v5  ;;  %v1750_v62 = vsel %vm323_vm1, %v1696_v51, 0.0 }
 0x12f   : > { %1738 = vst.msk [vmem:[%s2560_s30 + $0x1c] sm:$0xf] %vm1730_vm3, %v2016_v45  ;;  %v1768_v7 = vmul.f32 %v1696_v51, %v1696_v51  ;;  %v1783_v14 = vsel %vm323_vm1, %v1769_v3, 0.0 }
 0x130   : > { %1737 = vst.msk [vmem:[%s2560_s30 + $0x18] sm:$0xf] %vm1730_vm3, %v2015_v55  ;;  %v1751_v6 = vadd.f32 %v1750_v62, %v1749_v60  ;;  %v1780_v8 = vadd.f32 %v1779_v57, %v1778_v53 }
 0x131   : > { %v1781_v10 = vsel %vm323_vm1, %v1768_v7, 0.0 }
 0x132   : > { %v1753_v12 = vadd.f32 %v1752_v9, %v1751_v6  ;;  %v1782_v13 = vadd.f32 %v1781_v10, %v1780_v8 }
 0x134   : > { %v1754_v15 = vrot.slane %v1753_v12, 4  ;;  %v1784_v17 = vadd.f32 %v1783_v14, %v1782_v13 }
 0x136   : > { %v1755_v59 = vadd.f32 %v1754_v15, %v1753_v12  ;;  %v1785_v18 = vrot.slane %v1784_v17, 4 }
 0x138   : > { %v1756_v19 = vrot.slane %v1755_v59, 2  ;;  %v1786_v20 = vadd.f32 %v1785_v18, %v1784_v17 }
 0x13a   : > { %v1757_v61 = vadd.f32 %v1756_v19, %v1755_v59  ;;  %v1787_v11 = vrot.slane %v1786_v20, 2 }
 0x13c   : > { %v1758_v16 = vrot.slane %v1757_v61, 1  ;;  %v1788_v22 = vadd.f32 %v1787_v11, %v1786_v20 }
 0x13e   : > { %v1759_v23 = vadd.f32 %v1758_v16, %v1757_v61  ;;  %v1789_v25 = vrot.slane %v1788_v22, 1 }
 0x140   : > { %1761 = vst.msk [vmem:[%s265_s8] sm:$0x1] %vm1760_vm4, %v1759_v23  ;;  %v1790_v31 = vadd.f32 %v1789_v25, %v1788_v22 }
 0x142   : > { %1791 = vst.msk [vmem:[%s268_s11] sm:$0x1] %vm1760_vm4, %v1790_v31 }
 0x143 PF: > { %s17_s21 = sadd.s32 1, %s2260_s21  }
 0x144   : > { %p14_p4 = scmp.ge.s32.totalorder %s17_s21, 4  }
 0x146   :  { %16 = sbr.rel (!%p14_p4) target bundleno = 1 (0x1), region = 100 }

</bundles_post_ra>
